<compile_context>
chip_gen: v7x
topology: tpu7x:2x2x1
jax: 0.10.0
libtpu: 0.0.40
codegen_flags: <defaults>
</compile_context>

<pallas_src>
import math

import jax
import jax.numpy as jnp
from jax.experimental import pallas as pl
from jax.experimental.pallas import tpu as pltpu

_LANE = 128
_NEG_INF = -1e30


# --------------------------------------------------------------------------
# Small helpers
# --------------------------------------------------------------------------
def _round_up(x, m):
    return (x + m - 1) // m * m


def _vmem_capacity_bytes():
    """Physical VMEM per TensorCore (128 MiB v5e/v6e, 64 MiB v7x)."""
    cap = None
    try:
        info = pltpu.get_tpu_info()
        cap = int(getattr(info, "vmem_capacity_bytes", 0)) or None
    except Exception:
        cap = None
    if cap is None:
        try:
            kind = jax.devices()[0].device_kind.lower()
        except Exception:
            kind = ""
        if "v7" in kind:
            cap = 64 * 1024 * 1024
        elif ("v5" in kind) or ("v6" in kind):
            cap = 128 * 1024 * 1024
        else:
            cap = 64 * 1024 * 1024          # conservative default
    return int(min(max(cap, 32 * 1024 * 1024), 128 * 1024 * 1024))


def _pad2d(w, rows, cols, dtype, fill=0.0):
    out = jnp.full((rows, cols), fill, dtype)
    return out.at[: w.shape[0], : w.shape[1]].set(w.astype(dtype))


def _fused_plan(n, vmem_cap):
    """(n_pad, row_tile) if the bf16 adjacency fits resident in VMEM, else None."""
    n_pad = _round_up(max(n, _LANE), _LANE)
    # A resident (assume the pipeline double-buffers it) + per-step row-slice
    # value + X / h1 scratch / out / intermediates, all counted generously.
    need = 4 * n_pad * n_pad + 2048 * n_pad + (8 << 20)
    if need > int(0.7 * vmem_cap):
        return None
    tm = next(t for t in (512, 384, 256, 128) if n_pad % t == 0)
    return n_pad, tm


def _streaming_plan(n, vmem_cap):
    """(n_pad, row_tile, n_tiles) for the two-pass streaming path."""
    n_pad0 = _round_up(max(n, _LANE), _LANE)
    budget = int(0.6 * vmem_cap)
    resident = 2 * (2 * n_pad0 * _LANE) + (4 << 20)      # resident X/h1 (bf16, x2 bufs) + slack
    per_row = 2 * (2 * n_pad0 + 4 * _LANE + 2 * _LANE)   # dbl-buffered A row + out row + self row
    tm = max(budget - resident, per_row * 128) // per_row
    tm = int(max(128, min((tm // 128) * 128, 1024, n_pad0)))
    n_tiles = pl.cdiv(n_pad0, tm)
    if n_tiles == 1 and n_pad0 >= 2 * 128:
        n_tiles = 2                                      # give both v7x TCs work
    if n_tiles > 1 and n_tiles % 2 == 1:
        n_tiles += 1                                     # even grid for the 2-TC split
    tm = _round_up(pl.cdiv(n_pad0, n_tiles), 128)
    n_pad = tm * n_tiles
    return n_pad, tm, n_tiles


# --------------------------------------------------------------------------
# Fused kernel: A resident in VMEM (single HBM read of the O(N^2) operand).
# grid = (2 layer-phases [arbitrary], n_row_tiles [arbitrary]);
# h1 lives in a VMEM scratch between the phases.
# --------------------------------------------------------------------------
def _fused_kernel(a_ref, x_full_ref, x_self_ref,
                  w1l_ref, w1r_ref, b1_ref,
                  w2l_ref, w2r_ref, b2_ref,
                  wlin_ref, blin_ref,
                  out_ref, h1_scr):
    phase = pl.program_id(0)
    i = pl.program_id(1)
    tm = out_ref.shape[0]
    start = pl.multiple_of(i * tm, tm)
    a_tile = a_ref[pl.ds(start, tm), :]            # (tm, N) bf16 rows of resident A

    @pl.when(phase == 0)
    def _layer1():
        # Mean aggregation (bf16 MXU, f32 accumulate) + SAGEConv1 + ReLU.
        agg = jnp.dot(a_tile, x_full_ref[...], preferred_element_type=jnp.float32)
        h1 = (jnp.dot(agg.astype(jnp.bfloat16), w1l_ref[...],
                      preferred_element_type=jnp.float32)
              + jnp.dot(x_self_ref[...], w1r_ref[...],
                        preferred_element_type=jnp.float32)
              + b1_ref[...])
        h1 = jnp.maximum(h1, 0.0)                  # ReLU; dropout = identity (eval)
        h1_scr[pl.ds(start, tm), :] = h1.astype(h1_scr.dtype)
        out_ref[...] = jnp.zeros_like(out_ref)     # placeholder; overwritten in phase 1

    @pl.when(phase == 1)
    def _layer2_head():
        h1_full = h1_scr[...]
        h1_self = h1_scr[pl.ds(start, tm), :]
        agg = jnp.dot(a_tile, h1_full, preferred_element_type=jnp.float32)
        h2 = (jnp.dot(agg.astype(jnp.bfloat16), w2l_ref[...],
                      preferred_element_type=jnp.float32)
              + jnp.dot(h1_self, w2r_ref[...],
                        preferred_element_type=jnp.float32)
              + b2_ref[...])
        h2 = jnp.maximum(h2, 0.0)                  # ReLU; dropout = identity (eval)
        # Head into the lane-dense padded class dim; padded bias cols = -1e30
        # so exp(.) underflows to 0 and the normalization is unchanged.
        logits = (jnp.dot(h2.astype(jnp.bfloat16), wlin_ref[...],
                          preferred_element_type=jnp.float32)
                  + blin_ref[...])
        m = jnp.max(logits, axis=-1, keepdims=True)
        s = logits - m
        out_ref[...] = s - jnp.log(jnp.sum(jnp.exp(s), axis=-1, keepdims=True))


# --------------------------------------------------------------------------
# Streaming (two-pass) kernels for large N: A is row-tiled from HBM.
# --------------------------------------------------------------------------
def _sage1_stream_kernel(a_ref, x_full_ref, x_self_ref,
                         w1l_ref, w1r_ref, b1_ref, h1_ref):
    agg = jnp.dot(a_ref[...], x_full_ref[...], preferred_element_type=jnp.float32)
    h1 = (jnp.dot(agg.astype(jnp.bfloat16), w1l_ref[...],
                  preferred_element_type=jnp.float32)
          + jnp.dot(x_self_ref[...], w1r_ref[...],
                    preferred_element_type=jnp.float32)
          + b1_ref[...])
    h1_ref[...] = jnp.maximum(h1, 0.0).astype(h1_ref.dtype)   # ReLU; eval dropout = id


def _sage2_head_stream_kernel(a_ref, h1_full_ref, h1_self_ref,
                              w2l_ref, w2r_ref, b2_ref,
                              wlin_ref, blin_ref, out_ref):
    agg = jnp.dot(a_ref[...], h1_full_ref[...], preferred_element_type=jnp.float32)
    h2 = (jnp.dot(agg.astype(jnp.bfloat16), w2l_ref[...],
                  preferred_element_type=jnp.float32)
          + jnp.dot(h1_self_ref[...], w2r_ref[...],
                    preferred_element_type=jnp.float32)
          + b2_ref[...])
    h2 = jnp.maximum(h2, 0.0)
    logits = (jnp.dot(h2.astype(jnp.bfloat16), wlin_ref[...],
                      preferred_element_type=jnp.float32)
              + blin_ref[...])
    m = jnp.max(logits, axis=-1, keepdims=True)
    s = logits - m
    out_ref[...] = s - jnp.log(jnp.sum(jnp.exp(s), axis=-1, keepdims=True))


# --------------------------------------------------------------------------
# Glue: dense mean-aggregation adjacency, built directly in bf16 (padded).
# --------------------------------------------------------------------------
def build_mean_adjacency(edge_index, edge_weight, num_nodes,
                         padded_num_nodes=None, dtype=jnp.bfloat16):
    """A_norm[i, j] = sum_{edges j->i} w / indeg(i)  (PyG 'mean' aggregation).

    Built directly at the padded size in the kernel dtype: the per-edge 1/deg
    normalization is folded in f32 before the scatter, so no f32 N^2 temp."""
    n_pad = padded_num_nodes if padded_num_nodes is not None else num_nodes
    src, dst = edge_index[0], edge_index[1]
    deg = jnp.zeros((num_nodes,), jnp.float32).at[dst].add(1.0)
    inv_deg = 1.0 / jnp.maximum(deg, 1.0)
    w = (edge_weight.astype(jnp.float32) * inv_deg[dst]).astype(dtype)
    return jnp.zeros((n_pad, n_pad), dtype).at[dst, src].add(w)


# --------------------------------------------------------------------------
# Forward wrapper
# --------------------------------------------------------------------------
def graphsage_forward(x, edge_index, edge_weight, params, *, path="auto"):
    """GraphSAGE forward (eval mode).  path: 'auto' | 'fused' | 'streaming'."""
    n, f = x.shape
    hidden = params["w1l"].shape[1]
    num_class = params["wlin"].shape[1]

    f_p = _round_up(f, _LANE)
    h_p = _round_up(hidden, _LANE)
    c_p = _round_up(num_class, _LANE)          # lane-dense final stores

    vmem_cap = _vmem_capacity_bytes()
    fused_plan = _fused_plan(n, vmem_cap)
    if path == "fused" and fused_plan is None:
        raise ValueError("adjacency does not fit resident in VMEM; use path='streaming'")
    use_fused = (path == "fused") or (path == "auto" and fused_plan is not None)

    # Kernel-facing weights: zero-padded to 128 lanes, bf16 (f32 accumulate in
    # kernel); biases stay f32.  Padded head-bias columns are -1e30.
    w1l = _pad2d(params["w1l"], f_p, h_p, jnp.bfloat16)
    w1r = _pad2d(params["w1r"], f_p, h_p, jnp.bfloat16)
    b1 = _pad2d(params["b1"], 1, h_p, jnp.float32)
    w2l = _pad2d(params["w2l"], h_p, h_p, jnp.bfloat16)
    w2r = _pad2d(params["w2r"], h_p, h_p, jnp.bfloat16)
    b2 = _pad2d(params["b2"], 1, h_p, jnp.float32)
    wlin = _pad2d(params["wlin"], h_p, c_p, jnp.bfloat16)
    blin = _pad2d(params["blin"], 1, c_p, jnp.float32, fill=_NEG_INF)

    vmem_limit = int(0.8 * vmem_cap)

    if use_fused:
        # ---------------- fused path: A read from HBM exactly once ----------
        n_pad, tm = fused_plan
        a_p = build_mean_adjacency(edge_index, edge_weight, n, n_pad)
        x_p = jnp.zeros((n_pad, f_p), jnp.bfloat16).at[:n, :f].set(
            x.astype(jnp.bfloat16))

        def res(shape):
            return pl.BlockSpec(shape, lambda l, i: (0, 0))

        out_p = pl.pallas_call(
            _fused_kernel,
            out_shape=jax.ShapeDtypeStruct((n_pad, c_p), jnp.float32),
            grid=(2, n_pad // tm),
            in_specs=[res((n_pad, n_pad)),                         # A resident
                      res((n_pad, f_p)),                           # X (aggregation)
                      pl.BlockSpec((tm, f_p), lambda l, i: (i, 0)),  # X self rows
                      res((f_p, h_p)), res((f_p, h_p)), res((1, h_p)),
                      res((h_p, h_p)), res((h_p, h_p)), res((1, h_p)),
                      res((h_p, c_p)), res((1, c_p))],
            out_specs=pl.BlockSpec((tm, c_p), lambda l, i: (i, 0)),
            scratch_shapes=[pltpu.VMEM((n_pad, h_p), jnp.bfloat16)],  # h1 between phases
            compiler_params=pltpu.CompilerParams(
                dimension_semantics=("arbitrary", "arbitrary"),
                vmem_limit_bytes=vmem_limit),
        )(a_p, x_p, x_p, w1l, w1r, b1, w2l, w2r, b2, wlin, blin)
        return out_p[:n, :num_class]

    # ---------------- streaming path: two row-tiled passes over A ----------
    n_pad, tm, n_tiles = _streaming_plan(n, vmem_cap)
    a_p = build_mean_adjacency(edge_index, edge_weight, n, n_pad)
    x_p = jnp.zeros((n_pad, f_p), jnp.bfloat16).at[:n, :f].set(
        x.astype(jnp.bfloat16))

    cparams = pltpu.CompilerParams(
        dimension_semantics=("parallel",),       # independent row tiles
        vmem_limit_bytes=vmem_limit)
    a_spec = pl.BlockSpec((tm, n_pad), lambda i: (i, 0))

    def row(cols):
        return pl.BlockSpec((tm, cols), lambda i: (i, 0))

    def res(shape):
        return pl.BlockSpec(shape, lambda i: (0, 0))

    h1 = pl.pallas_call(
        _sage1_stream_kernel,
        out_shape=jax.ShapeDtypeStruct((n_pad, h_p), jnp.bfloat16),
        grid=(n_tiles,),
        in_specs=[a_spec, res((n_pad, f_p)), row(f_p),
                  res((f_p, h_p)), res((f_p, h_p)), res((1, h_p))],
        out_specs=row(h_p),
        compiler_params=cparams,
    )(a_p, x_p, x_p, w1l, w1r, b1)

    out_p = pl.pallas_call(
        _sage2_head_stream_kernel,
        out_shape=jax.ShapeDtypeStruct((n_pad, c_p), jnp.float32),
        grid=(n_tiles,),
        in_specs=[a_spec, res((n_pad, h_p)), row(h_p),
                  res((h_p, h_p)), res((h_p, h_p)), res((1, h_p)),
                  res((h_p, c_p)), res((1, c_p))],
        out_specs=row(c_p),
        compiler_params=cparams,
    )(a_p, h1, h1, w2l, w2r, b2, wlin, blin)

    return out_p[:n, :num_class]


# --------------------------------------------------------------------------
# Parameter init (torch.nn.Linear-style, weights stored [in, out]) + f32 ref.
# --------------------------------------------------------------------------
def init_params(key, features_num=16, hidden=16, num_class=2):
    ks = jax.random.split(key, 10)

    def lin(kw, kb, fan_in, fan_out, bias=True):
        bound = 1.0 / math.sqrt(fan_in)
        w = jax.random.uniform(kw, (fan_in, fan_out), jnp.float32, -bound, bound)
        b = (jax.random.uniform(kb, (1, fan_out), jnp.float32, -bound, bound)
             if bias else None)
        return w, b

    w1l, b1 = lin(ks[0], ks[1], features_num, hidden, bias=True)
    w1r, _ = lin(ks[2], ks[3], features_num, hidden, bias=False)   # lin_r: no bias
    w2l, b2 = lin(ks[4], ks[5], hidden, hidden, bias=True)
    w2r, _ = lin(ks[6], ks[7], hidden, hidden, bias=False)
    wlin, blin = lin(ks[8], ks[9], hidden, num_class, bias=True)

    return {"w1l": w1l, "w1r": w1r, "b1": b1,
            "w2l": w2l, "w2r": w2r, "b2": b2,
            "wlin": wlin, "blin": blin}


def _reference_forward(x, edge_index, edge_weight, params):
    """Pure-JAX f32 reference of the module's forward (eval mode)."""
    n = x.shape[0]
    src, dst = edge_index[0], edge_index[1]
    deg = jnp.maximum(jnp.zeros((n,), jnp.float32).at[dst].add(1.0), 1.0)
    a = jnp.zeros((n, n), jnp.float32).at[dst, src].add(edge_weight) / deg[:, None]
    h = jnp.maximum((a @ x) @ params["w1l"] + x @ params["w1r"] + params["b1"], 0.0)
    h = jnp.maximum((a @ h) @ params["w2l"] + h @ params["w2r"] + params["b2"], 0.0)
    logits = h @ params["wlin"] + params["blin"]
    return jax.nn.log_softmax(logits, axis=-1)


# --------------------------------------------------------------------------
# Demo / self-check
# --------------------------------------------------------------------------
if __name__ == "__main__":
    key = jax.random.PRNGKey(0)
    k_x, k_src, k_dst, k_w, k_p = jax.random.split(key, 5)

    N, E = 256, 1024
    features_num, hidden, num_class = 16, 16, 2

    x = jax.random.normal(k_x, (N, features_num), jnp.float32)
    src = jax.random.randint(k_src, (E,), 0, N, dtype=jnp.int32)
    dst = jax.random.randint(k_dst, (E,), 0, N, dtype=jnp.int32)
    edge_index = jnp.stack([src, dst], axis=0)                 # [2, E]
    edge_weight = jax.random.uniform(k_w, (E,), jnp.float32)   # [E]

    params = init_params(k_p, features_num, hidden, num_class)

    # Fused path (A resident, single HBM read) and streaming fallback.
    out_fused = graphsage_forward(x, edge_index, edge_weight, params, path="auto")
    out_stream = graphsage_forward(x, edge_index, edge_weight, params, path="streaming")
    out_fused, out_stream = jax.block_until_ready((out_fused, out_stream))

    ref = _reference_forward(x, edge_index, edge_weight, params)

    for out in (out_fused, out_stream):
        assert out.shape == (N, num_class)
        assert bool(jnp.all(jnp.isfinite(out)))
        # log_softmax rows must exp-sum to 1.
        assert bool(jnp.allclose(jnp.sum(jnp.exp(out), axis=-1), 1.0, atol=1e-4))
    assert float(jnp.max(jnp.abs(out_fused - out_stream))) < 5e-2
    assert float(jnp.max(jnp.abs(out_fused - ref))) < 2e-1      # bf16 quantization tol

    print("KERNEL_OK")
</pallas_src>

<mosaic_0001>
module attributes {stable_mosaic.version = 11 : i64} {
  func.func @_fused_kernel(%arg0: i32, %arg1: i32, %arg2: memref<256x256xbf16, #tpu.memory_space<vmem>>, %arg3: memref<256x128xbf16, #tpu.memory_space<vmem>>, %arg4: memref<256x128xbf16, #tpu.memory_space<vmem>>, %arg5: memref<128x128xbf16, #tpu.memory_space<vmem>>, %arg6: memref<128x128xbf16, #tpu.memory_space<vmem>>, %arg7: memref<1x128xf32, #tpu.memory_space<vmem>>, %arg8: memref<128x128xbf16, #tpu.memory_space<vmem>>, %arg9: memref<128x128xbf16, #tpu.memory_space<vmem>>, %arg10: memref<1x128xf32, #tpu.memory_space<vmem>>, %arg11: memref<128x128xbf16, #tpu.memory_space<vmem>>, %arg12: memref<1x128xf32, #tpu.memory_space<vmem>>, %arg13: memref<256x128xf32, #tpu.memory_space<vmem>>, %arg14: memref<256x128xbf16, #tpu.memory_space<vmem>>) attributes {dimension_semantics = [#tpu.dimension_semantics<arbitrary>, #tpu.dimension_semantics<arbitrary>], iteration_bounds = array<i64: 2, 1>, scalar_prefetch = 0 : i64, scratch_operands = 1 : i64, tpu.core_type = #tpu.core_type<tc>, window_params = [{pipeline_mode = #tpu.pipeline_mode<synchronous>, transform_indices = @transform_0, window_bounds = array<i64: 256, 256>}, {pipeline_mode = #tpu.pipeline_mode<synchronous>, transform_indices = @transform_1, window_bounds = array<i64: 256, 128>}, {transform_indices = @transform_2, window_bounds = array<i64: 256, 128>}, {pipeline_mode = #tpu.pipeline_mode<synchronous>, transform_indices = @transform_3, window_bounds = array<i64: 128, 128>}, {pipeline_mode = #tpu.pipeline_mode<synchronous>, transform_indices = @transform_4, window_bounds = array<i64: 128, 128>}, {pipeline_mode = #tpu.pipeline_mode<synchronous>, transform_indices = @transform_5, window_bounds = array<i64: 1, 128>}, {pipeline_mode = #tpu.pipeline_mode<synchronous>, transform_indices = @transform_6, window_bounds = array<i64: 128, 128>}, {pipeline_mode = #tpu.pipeline_mode<synchronous>, transform_indices = @transform_7, window_bounds = array<i64: 128, 128>}, {pipeline_mode = #tpu.pipeline_mode<synchronous>, transform_indices = @transform_8, window_bounds = array<i64: 1, 128>}, {pipeline_mode = #tpu.pipeline_mode<synchronous>, transform_indices = @transform_9, window_bounds = array<i64: 128, 128>}, {pipeline_mode = #tpu.pipeline_mode<synchronous>, transform_indices = @transform_10, window_bounds = array<i64: 1, 128>}, {transform_indices = @transform_11, window_bounds = array<i64: 256, 128>}]} {
    %c256_i32 = arith.constant 256 : i32
    %0 = arith.muli %arg1, %c256_i32 : i32
    %1 = tpu.assume_multiple %0, 256 : i32
    %2 = arith.index_cast %1 : i32 to index
    %c0 = arith.constant 0 : index
    %3 = vector.load %arg2[%2, %c0] : memref<256x256xbf16, #tpu.memory_space<vmem>>, vector<256x256xbf16>
    %c0_i32 = arith.constant 0 : i32
    %4 = arith.cmpi eq, %arg0, %c0_i32 : i32
    %5 = arith.extui %4 : i1 to i32
    %c0_i32_0 = arith.constant 0 : i32
    %6 = arith.cmpi ne, %5, %c0_i32_0 : i32
    scf.if %6 {
      %c0_2 = arith.constant 0 : index
      %c0_3 = arith.constant 0 : index
      %10 = vector.load %arg3[%c0_2, %c0_3] : memref<256x128xbf16, #tpu.memory_space<vmem>>, vector<256x128xbf16>
      %cst = arith.constant dense<0.000000e+00> : vector<256x128xf32>
      %11 = tpu.matmul %3, %10, %cst {dimension_numbers = #tpu.dot_dimension_numbers<[1], [0], [0], [1], [0, 0, 1, 1], [], []>} : vector<256x256xbf16>, vector<256x128xbf16>, vector<256x128xf32> -> vector<256x128xf32>
      %12 = arith.truncf %11 : vector<256x128xf32> to vector<256x128xbf16>
      %c0_4 = arith.constant 0 : index
      %c0_5 = arith.constant 0 : index
      %13 = vector.load %arg5[%c0_4, %c0_5] : memref<128x128xbf16, #tpu.memory_space<vmem>>, vector<128x128xbf16>
      %cst_6 = arith.constant dense<0.000000e+00> : vector<256x128xf32>
      %14 = tpu.matmul %12, %13, %cst_6 {dimension_numbers = #tpu.dot_dimension_numbers<[1], [0], [0], [1], [0, 0, 1, 1], [], []>} : vector<256x128xbf16>, vector<128x128xbf16>, vector<256x128xf32> -> vector<256x128xf32>
      %c0_7 = arith.constant 0 : index
      %c0_8 = arith.constant 0 : index
      %15 = vector.load %arg4[%c0_7, %c0_8] : memref<256x128xbf16, #tpu.memory_space<vmem>>, vector<256x128xbf16>
      %c0_9 = arith.constant 0 : index
      %c0_10 = arith.constant 0 : index
      %16 = vector.load %arg6[%c0_9, %c0_10] : memref<128x128xbf16, #tpu.memory_space<vmem>>, vector<128x128xbf16>
      %cst_11 = arith.constant dense<0.000000e+00> : vector<256x128xf32>
      %17 = tpu.matmul %15, %16, %cst_11 {dimension_numbers = #tpu.dot_dimension_numbers<[1], [0], [0], [1], [0, 0, 1, 1], [], []>} : vector<256x128xbf16>, vector<128x128xbf16>, vector<256x128xf32> -> vector<256x128xf32>
      %18 = arith.addf %14, %17 : vector<256x128xf32>
      %c0_12 = arith.constant 0 : index
      %c0_13 = arith.constant 0 : index
      %19 = vector.load %arg7[%c0_12, %c0_13] : memref<1x128xf32, #tpu.memory_space<vmem>>, vector<1x128xf32>
      %20 = vector.broadcast %19 : vector<1x128xf32> to vector<256x128xf32>
      %21 = arith.addf %18, %20 : vector<256x128xf32>
      %cst_14 = arith.constant 0.000000e+00 : f32
      %22 = vector.broadcast %cst_14 : f32 to vector<256x128xf32>
      %23 = arith.maximumf %21, %22 : vector<256x128xf32>
      %24 = arith.truncf %23 : vector<256x128xf32> to vector<256x128xbf16>
      %25 = arith.index_cast %1 : i32 to index
      %c0_15 = arith.constant 0 : index
      %26 = vector.load %arg14[%25, %c0_15] : memref<256x128xbf16, #tpu.memory_space<vmem>>, vector<256x128xbf16>
      tpu.vector_store %arg14[%25, %c0_15], %24 {strides = array<i32>} : memref<256x128xbf16, #tpu.memory_space<vmem>>, vector<256x128xbf16>,
      %cst_16 = arith.constant 0.000000e+00 : f32
      %27 = vector.broadcast %cst_16 : f32 to vector<256x128xf32>
      %c0_17 = arith.constant 0 : index
      %c0_18 = arith.constant 0 : index
      %28 = vector.load %arg13[%c0_17, %c0_18] : memref<256x128xf32, #tpu.memory_space<vmem>>, vector<256x128xf32>
      tpu.vector_store %arg13[%c0_17, %c0_18], %27 {strides = array<i32>} : memref<256x128xf32, #tpu.memory_space<vmem>>, vector<256x128xf32>,
    } else {
    }
    %c1_i32 = arith.constant 1 : i32
    %7 = arith.cmpi eq, %arg0, %c1_i32 : i32
    %8 = arith.extui %7 : i1 to i32
    %c0_i32_1 = arith.constant 0 : i32
    %9 = arith.cmpi ne, %8, %c0_i32_1 : i32
    scf.if %9 {
      %c0_2 = arith.constant 0 : index
      %c0_3 = arith.constant 0 : index
      %10 = vector.load %arg14[%c0_2, %c0_3] : memref<256x128xbf16, #tpu.memory_space<vmem>>, vector<256x128xbf16>
      %11 = arith.index_cast %1 : i32 to index
      %c0_4 = arith.constant 0 : index
      %12 = vector.load %arg14[%11, %c0_4] : memref<256x128xbf16, #tpu.memory_space<vmem>>, vector<256x128xbf16>
      %cst = arith.constant dense<0.000000e+00> : vector<256x128xf32>
      %13 = tpu.matmul %3, %10, %cst {dimension_numbers = #tpu.dot_dimension_numbers<[1], [0], [0], [1], [0, 0, 1, 1], [], []>} : vector<256x256xbf16>, vector<256x128xbf16>, vector<256x128xf32> -> vector<256x128xf32>
      %14 = arith.truncf %13 : vector<256x128xf32> to vector<256x128xbf16>
      %c0_5 = arith.constant 0 : index
      %c0_6 = arith.constant 0 : index
      %15 = vector.load %arg8[%c0_5, %c0_6] : memref<128x128xbf16, #tpu.memory_space<vmem>>, vector<128x128xbf16>
      %cst_7 = arith.constant dense<0.000000e+00> : vector<256x128xf32>
      %16 = tpu.matmul %14, %15, %cst_7 {dimension_numbers = #tpu.dot_dimension_numbers<[1], [0], [0], [1], [0, 0, 1, 1], [], []>} : vector<256x128xbf16>, vector<128x128xbf16>, vector<256x128xf32> -> vector<256x128xf32>
      %c0_8 = arith.constant 0 : index
      %c0_9 = arith.constant 0 : index
      %17 = vector.load %arg9[%c0_8, %c0_9] : memref<128x128xbf16, #tpu.memory_space<vmem>>, vector<128x128xbf16>
      %cst_10 = arith.constant dense<0.000000e+00> : vector<256x128xf32>
      %18 = tpu.matmul %12, %17, %cst_10 {dimension_numbers = #tpu.dot_dimension_numbers<[1], [0], [0], [1], [0, 0, 1, 1], [], []>} : vector<256x128xbf16>, vector<128x128xbf16>, vector<256x128xf32> -> vector<256x128xf32>
      %19 = arith.addf %16, %18 : vector<256x128xf32>
      %c0_11 = arith.constant 0 : index
      %c0_12 = arith.constant 0 : index
      %20 = vector.load %arg10[%c0_11, %c0_12] : memref<1x128xf32, #tpu.memory_space<vmem>>, vector<1x128xf32>
      %21 = vector.broadcast %20 : vector<1x128xf32> to vector<256x128xf32>
      %22 = arith.addf %19, %21 : vector<256x128xf32>
      %cst_13 = arith.constant 0.000000e+00 : f32
      %23 = vector.broadcast %cst_13 : f32 to vector<256x128xf32>
      %24 = arith.maximumf %22, %23 : vector<256x128xf32>
      %25 = arith.truncf %24 : vector<256x128xf32> to vector<256x128xbf16>
      %c0_14 = arith.constant 0 : index
      %c0_15 = arith.constant 0 : index
      %26 = vector.load %arg11[%c0_14, %c0_15] : memref<128x128xbf16, #tpu.memory_space<vmem>>, vector<128x128xbf16>
      %cst_16 = arith.constant dense<0.000000e+00> : vector<256x128xf32>
      %27 = tpu.matmul %25, %26, %cst_16 {dimension_numbers = #tpu.dot_dimension_numbers<[1], [0], [0], [1], [0, 0, 1, 1], [], []>} : vector<256x128xbf16>, vector<128x128xbf16>, vector<256x128xf32> -> vector<256x128xf32>
      %c0_17 = arith.constant 0 : index
      %c0_18 = arith.constant 0 : index
      %28 = vector.load %arg12[%c0_17, %c0_18] : memref<1x128xf32, #tpu.memory_space<vmem>>, vector<1x128xf32>
      %29 = vector.broadcast %28 : vector<1x128xf32> to vector<256x128xf32>
      %30 = arith.addf %27, %29 : vector<256x128xf32>
      %cst_19 = arith.constant dense<0xFF800000> : vector<256xf32>
      %31 = vector.multi_reduction <maximumf>, %30, %cst_19 [1] : vector<256x128xf32> to vector<256xf32>
      %32 = vector.shape_cast %31 : vector<256xf32> to vector<256x1xf32>
      %33 = vector.broadcast %32 : vector<256x1xf32> to vector<256x128xf32>
      %34 = arith.subf %30, %33 : vector<256x128xf32>
      %35 = math.exp %34 : vector<256x128xf32>
      %cst_20 = arith.constant dense<0.000000e+00> : vector<256xf32>
      %36 = vector.multi_reduction <add>, %35, %cst_20 [1] : vector<256x128xf32> to vector<256xf32>
      %37 = vector.shape_cast %36 : vector<256xf32> to vector<256x1xf32>
      %38 = math.log %37 : vector<256x1xf32>
      %39 = vector.broadcast %38 : vector<256x1xf32> to vector<256x128xf32>
      %40 = arith.subf %34, %39 : vector<256x128xf32>
      %c0_21 = arith.constant 0 : index
      %c0_22 = arith.constant 0 : index
      %41 = vector.load %arg13[%c0_21, %c0_22] : memref<256x128xf32, #tpu.memory_space<vmem>>, vector<256x128xf32>
      tpu.vector_store %arg13[%c0_21, %c0_22], %40 {strides = array<i32>} : memref<256x128xf32, #tpu.memory_space<vmem>>, vector<256x128xf32>,
    } else {
    }
    return
  }
  func.func @transform_0(%arg0: i32, %arg1: i32) -> (i32, i32) {
    %c0_i32 = arith.constant 0 : i32
    %c0_i32_0 = arith.constant 0 : i32
    %c0_i32_1 = arith.constant 0 : i32
    return %c0_i32, %c0_i32_0 : i32, i32
  }
  func.func @transform_1(%arg0: i32, %arg1: i32) -> (i32, i32) {
    %c0_i32 = arith.constant 0 : i32
    %c0_i32_0 = arith.constant 0 : i32
    %c0_i32_1 = arith.constant 0 : i32
    return %c0_i32, %c0_i32_0 : i32, i32
  }
  func.func @transform_2(%arg0: i32, %arg1: i32) -> (i32, i32) {
    %c0_i32 = arith.constant 0 : i32
    %c0_i32_0 = arith.constant 0 : i32
    return %arg1, %c0_i32 : i32, i32
  }
  func.func @transform_3(%arg0: i32, %arg1: i32) -> (i32, i32) {
    %c0_i32 = arith.constant 0 : i32
    %c0_i32_0 = arith.constant 0 : i32
    %c0_i32_1 = arith.constant 0 : i32
    return %c0_i32, %c0_i32_0 : i32, i32
  }
  func.func @transform_4(%arg0: i32, %arg1: i32) -> (i32, i32) {
    %c0_i32 = arith.constant 0 : i32
    %c0_i32_0 = arith.constant 0 : i32
    %c0_i32_1 = arith.constant 0 : i32
    return %c0_i32, %c0_i32_0 : i32, i32
  }
  func.func @transform_5(%arg0: i32, %arg1: i32) -> (i32, i32) {
    %c0_i32 = arith.constant 0 : i32
    %c0_i32_0 = arith.constant 0 : i32
    %c0_i32_1 = arith.constant 0 : i32
    return %c0_i32, %c0_i32_0 : i32, i32
  }
  func.func @transform_6(%arg0: i32, %arg1: i32) -> (i32, i32) {
    %c0_i32 = arith.constant 0 : i32
    %c0_i32_0 = arith.constant 0 : i32
    %c0_i32_1 = arith.constant 0 : i32
    return %c0_i32, %c0_i32_0 : i32, i32
  }
  func.func @transform_7(%arg0: i32, %arg1: i32) -> (i32, i32) {
    %c0_i32 = arith.constant 0 : i32
    %c0_i32_0 = arith.constant 0 : i32
    %c0_i32_1 = arith.constant 0 : i32
    return %c0_i32, %c0_i32_0 : i32, i32
  }
  func.func @transform_8(%arg0: i32, %arg1: i32) -> (i32, i32) {
    %c0_i32 = arith.constant 0 : i32
    %c0_i32_0 = arith.constant 0 : i32
    %c0_i32_1 = arith.constant 0 : i32
    return %c0_i32, %c0_i32_0 : i32, i32
  }
  func.func @transform_9(%arg0: i32, %arg1: i32) -> (i32, i32) {
    %c0_i32 = arith.constant 0 : i32
    %c0_i32_0 = arith.constant 0 : i32
    %c0_i32_1 = arith.constant 0 : i32
    return %c0_i32, %c0_i32_0 : i32, i32
  }
  func.func @transform_10(%arg0: i32, %arg1: i32) -> (i32, i32) {
    %c0_i32 = arith.constant 0 : i32
    %c0_i32_0 = arith.constant 0 : i32
    %c0_i32_1 = arith.constant 0 : i32
    return %c0_i32, %c0_i32_0 : i32, i32
  }
  func.func @transform_11(%arg0: i32, %arg1: i32) -> (i32, i32) {
    %c0_i32 = arith.constant 0 : i32
    %c0_i32_0 = arith.constant 0 : i32
    return %arg1, %c0_i32 : i32, i32
  }
}

</mosaic_0001>

<bundles_post_ra>
// kernel: tpu_custom_call.1
= control target key start
LH: loop header
LB: loop body
LE: loop exit
PB: predicated region body
PF: predicated region fallthrough
CT: control target
= control target key end

     0   :  { %s5845_s0 = inlined_call_operand.hbm [shape: bf16[256,256], index: 0, kind: input, shape index: {}]   ;;  %s5846_s1 = inlined_call_operand.hbm [shape: bf16[256,128], index: 1, kind: input, shape index: {}]   ;;  %s5847_s2 = inlined_call_operand.hbm [shape: bf16[256,128], index: 2, kind: input, shape index: {}]   ;;  %s5848_s3 = inlined_call_operand.hbm [shape: bf16[128,128], index: 3, kind: input, shape index: {}]   ;;  %s5849_s4 = inlined_call_operand.hbm [shape: bf16[128,128], index: 4, kind: input, shape index: {}]   ;;  %s5850_s5 = inlined_call_operand.vmem [shape: f32[1,128], index: 5, kind: input, shape index: {}]   ;;  %s5851_s6 = inlined_call_operand.hbm [shape: bf16[128,128], index: 6, kind: input, shape index: {}]   ;;  %s5852_s7 = inlined_call_operand.hbm [shape: bf16[128,128], index: 7, kind: input, shape index: {}]   ;;  %s5853_s8 = inlined_call_operand.vmem [shape: f32[1,128], index: 8, kind: input, shape index: {}]   ;;  %s5854_s9 = inlined_call_operand.hbm [shape: bf16[128,128], index: 9, kind: input, shape index: {}]   ;;  %s5855_s10 = inlined_call_operand.vmem [shape: f32[1,128], index: 10, kind: input, shape index: {}]   ;;  %s5856_s11 = inlined_call_operand.hbm [shape: f32[256,128], index: 11, kind: output, shape index: {}]  }
   0x1   :  { %5867 = sst [smem:[#allocation25_spill]] %s5846_s1 }
   0x2   :  { %5868 = sst [smem:[#allocation26_spill]] %s5848_s3 }
   0x3   :  { %5869 = sst [smem:[#allocation27_spill]] %s5851_s6 }
   0x4   :  { %5870 = sst [smem:[#allocation28_spill]] %s5856_s11 }
   0x5   :  { %16 = vsyncpa [#allocation4], 0 }
   0x6   :  { %17 = vsyncpa [#allocation7], 0 }
   0x7   :  { %18 = vsyncpa [#allocation10], 0 }
   0x8   :  { %19 = vsyncpa [#allocation13], 0 }
   0x9   :  { %20 = vsyncpa [#allocation16], 0 }
   0xa   :  { %21 = vsyncpa [#allocation5], 0  ;;  %s4878_s17 = smov 0   ;;  %s4880_s18 = smov 0  }
   0xb   :  { %s4882_s19 = smov 0  }
   0xc LB: > { %5871 = sst [smem:[#allocation24_spill]] %s4800_s19  ;;  %s4802_s20 = smov [#allocation6]   ;;  %s4800_s19 = sphi %s4882_s19, %s5890_s19   ;;  %s4796_s18 = sphi %s4880_s18, %s5889_s18   ;;  %s4792_s17 = sphi %s4878_s17, %s5888_s17  }
   0xd   : > { %s331_s21 = sshll.u32 %s4802_s20, 4  ;;  %s5857_s22 = sadd.s32 4294967295, %s4800_s19   ;;  %s4902_s21 = int_to_ptr.vmem [resolvable:$true] %s331_s21 }
   0xe   : > { %p3358_p0 = scmp.ge.s32.totalorder %s4800_s19, 1  ;;  %p306_p1 = scmp.lt.s32.totalorder %s4800_s19, 3 }
   0xf   : > { %p4898_p2 = scmp.eq.s32.totalorder %s5857_s22, 0  ;;  %s4803_s25 = smov [#allocation9]  }
  0x10   : > { %p4904_p3 = pnand %p3358_p0, %p306_p1  ;;  %s360_s26 = sshll.u32 %s4803_s25, 4  ;;  %s4910_s26 = int_to_ptr.vmem [resolvable:$true] %s360_s26 }
  0x11   : > { %s5872_s23 = scalar_select %p4898_p2, 1, 0 }
  0x12   : > { %s5873_s24 = scalar_select %p4904_p3, 1, 0 }
  0x13   : > { %p4221_p4 = pneg %p4904_p3  ;;  %s4804_s28 = smov [#allocation12]  }
  0x14   : > { %s389_s29 = sshll.u32 %s4804_s28, 4  ;;  %s5875_s1 = sld [smem:[#allocation25_spill]]  ;;  %s4918_s29 = int_to_ptr.vmem [resolvable:$true] %s389_s29 }
  0x15   : > { %p4914_p5 = pnand %p4898_p2, %p4221_p4 }
  0x17   : > { %p4928_p7 = pneg %p4914_p5 }
  0x1a   : > { %s4504_s13 = scalar_lea.hbm %s5875_s1, 2048 }
  0x1b   : > { %p4505_p6 = scmp.ne.s32.totalorder %s5875_s1, %s4504_s13  ;;  %p4511_p10 = scmp.lt.u32.totalorder %s4504_s13, %s5875_s1 }
  0x1d   : > { %p4507_p8 = pnand %p4928_p7, %p4505_p6 }
  0x1f   : > { %p4508_p9 = pneg %p4507_p8 }
  0x21   : > { %p4513_p11 = pnand %p4511_p10, %p4508_p9 }
  0x23   : > { %4516 = shalt.err (!%p4513_p11)
}
  0x24   : > { %s4517_s28 = scalar_lea.vmem %s4902_s21, 2048  ;;  %p4525_p1 = scmp.lt.s32.totalorder %s4902_s21, %s4902_s21 }
  0x25   : > { %p4518_p12 = scmp.ne.s32.totalorder %s4902_s21, %s4517_s28  ;;  %p4526_p4 = scmp.lt.s32.totalorder %s4517_s28, %s4517_s28 }
  0x27   : > { %p4520_p13 = pnand %p4518_p12, %p4928_p7  ;;  %p4527_p6 = por %p4526_p4, %p4525_p1 }
  0x29   : > { %p4521_p0 = pneg %p4520_p13 }
  0x2b   : > { %p4528_p8 = pnand %p4527_p6, %p4521_p0 }
  0x2d   : > { %4531 = shalt.err (!%p4528_p8)
}
  0x2e   : > { %s5863_s30 = smov 64   ;;  %s5865_s12 = smov 4  }
  0x2f   : > { %4227 = dma.hbm_to_vmem [thread:$0]  (!%p4914_p5), %s5875_s1, 2048, %s4902_s21, [#allocation7], %s5863_s30, %s5863_s30, %s5865_s12  }
  0x30   : > { %s5877_s3 = sld [smem:[#allocation26_spill]] }
  0x36   : > { %s4532_s25 = scalar_lea.hbm %s5877_s3, 1024 }
  0x37   : > { %p4533_p9 = scmp.ne.s32.totalorder %s5877_s3, %s4532_s25  ;;  %p4539_p12 = scmp.lt.u32.totalorder %s4532_s25, %s5877_s3 }
  0x39   : > { %p4535_p10 = pnand %p4533_p9, %p4928_p7 }
  0x3b   : > { %p4536_p11 = pneg %p4535_p10 }
  0x3d   : > { %p4541_p13 = pnand %p4539_p12, %p4536_p11 }
  0x3f   : > { %4544 = shalt.err (!%p4541_p13)
}
  0x40   : > { %s4545_s21 = scalar_lea.vmem %s4910_s26, 1024  ;;  %p4553_p6 = scmp.lt.s32.totalorder %s4910_s26, %s4910_s26 }
  0x41   : > { %p4546_p0 = scmp.ne.s32.totalorder %s4910_s26, %s4545_s21  ;;  %p4554_p8 = scmp.lt.s32.totalorder %s4545_s21, %s4545_s21 }
  0x43   : > { %p4548_p1 = pnand %p4546_p0, %p4928_p7  ;;  %p4555_p9 = por %p4554_p8, %p4553_p6 }
  0x45   : > { %p4549_p4 = pneg %p4548_p1 }
  0x47   : > { %p4556_p10 = pnand %p4555_p9, %p4549_p4 }
  0x49   : > { %4559 = shalt.err (!%p4556_p10)
}
  0x4a   : > { %4233 = dma.hbm_to_vmem [thread:$0]  (!%p4914_p5), %s5877_s3, 1024, %s4910_s26, [#allocation10], %s5863_s30, %s5863_s30, %s5865_s12  }
  0x4b   : > { %s5878_s6 = sld [smem:[#allocation27_spill]] }
  0x51   : > { %s4560_s14 = scalar_lea.hbm %s5878_s6, 1024 }
  0x52   : > { %p4561_p11 = scmp.ne.s32.totalorder %s5878_s6, %s4560_s14  ;;  %p4567_p0 = scmp.lt.u32.totalorder %s4560_s14, %s5878_s6 }
  0x54   : > { %p4563_p12 = pnand %p4561_p11, %p4928_p7 }
  0x56   : > { %p4564_p13 = pneg %p4563_p12 }
  0x58   : > { %p4569_p1 = pnand %p4567_p0, %p4564_p13 }
  0x5a   : > { %4572 = shalt.err (!%p4569_p1)
}
  0x5b   : > { %s4573_s26 = scalar_lea.vmem %s4918_s29, 1024  ;;  %p4581_p9 = scmp.lt.s32.totalorder %s4918_s29, %s4918_s29 }
  0x5c   : > { %p4574_p4 = scmp.ne.s32.totalorder %s4918_s29, %s4573_s26  ;;  %p4582_p10 = scmp.lt.s32.totalorder %s4573_s26, %s4573_s26 }
  0x5e   : > { %p4576_p6 = pnand %p4574_p4, %p4928_p7  ;;  %p4583_p11 = por %p4582_p10, %p4581_p9 }
  0x60   : > { %p4577_p8 = pneg %p4576_p6 }
  0x62   : > { %p4584_p12 = pnand %p4583_p11, %p4577_p8 }
  0x64   : > { %4587 = shalt.err (!%p4584_p12)
}
  0x65   : > { %4239 = dma.hbm_to_vmem [thread:$0]  (!%p4914_p5), %s5878_s6, 1024, %s4918_s29, [#allocation13], %s5863_s30, %s5863_s30, %s5865_s12  }
  0x66   : > { %s39_s19 = sadd.s32 1, %s4796_s18  ;;  %s4807_s22 = smov [#allocation3]  }
  0x67   : > { %p41_p13 = scmp.ge.s32.totalorder %s39_s19, 2  ;;  %s318_s13 = sshll.u32 %s4807_s22, 4  ;;  %s319_s13 = int_to_ptr.vmem [resolvable:$true] %s318_s13 }
  0x68   : > { %s4588_s20 = scalar_lea.hbm %s5845_s0, 4096 }
  0x69   : > { %s5892_s19 = smov (%p41_p13, %s39_s19), 0  ;;  %p4589_p0 = scmp.ne.s32.totalorder %s5845_s0, %s4588_s20 }
  0x6a   : > { %p4595_p6 = scmp.lt.u32.totalorder %s4588_s20, %s5845_s0 }
  0x6b   : > { %p4591_p1 = pnand %p4589_p0, %p4928_p7 }
  0x6d   : > { %p4592_p4 = pneg %p4591_p1 }
  0x6f   : > { %p4597_p8 = pnand %p4595_p6, %p4592_p4 }
  0x71   : > { %4600 = shalt.err (!%p4597_p8)
}
  0x72   : > { %s4601_s21 = scalar_lea.vmem %s319_s13, 4096  ;;  %p4609_p12 = scmp.lt.s32.totalorder %s319_s13, %s319_s13 }
  0x73   : > { %p4602_p9 = scmp.ne.s32.totalorder %s319_s13, %s4601_s21  ;;  %p4610_p13 = scmp.lt.s32.totalorder %s4601_s21, %s4601_s21 }
  0x75   : > { %p4604_p10 = pnand %p4602_p9, %p4928_p7  ;;  %p4611_p2 = por %p4610_p13, %p4609_p12 }
  0x77   : > { %p4605_p11 = pneg %p4604_p10 }
  0x79   : > { %p4612_p3 = pnand %p4611_p2, %p4605_p11 }
  0x7b   : > { %4615 = shalt.err (!%p4612_p3)
}
  0x7c   : > { %s4808_s11 = smov 128   ;;  %s4809_s22 = smov 8  }
  0x7d   : > { %4224 = dma.hbm_to_vmem [thread:$0]  (!%p4914_p5), %s5845_s0, 4096, %s319_s13, [#allocation4], %s4808_s11, %s4808_s11, %s4809_s22  }
  0x7e   : > { %s4810_s20 = smov [#allocation8]   ;;  %s4811_s28 = smov [#allocation11]  }
  0x7f   : > { %s347_s25 = sshll.u32 %s4810_s20, 4  ;;  %s373_s26 = sshll.u32 %s4811_s28, 4  ;;  %s348_s25 = int_to_ptr.vmem [resolvable:$true] %s347_s25  ;;  %s374_s26 = int_to_ptr.vmem [resolvable:$true] %s373_s26 }
  0x80   : > { %s4616_s21 = scalar_lea.hbm %s5847_s2, 2048 }
  0x81   : > { %p4617_p2 = scmp.ne.s32.totalorder %s5847_s2, %s4616_s21  ;;  %p4623_p1 = scmp.lt.u32.totalorder %s4616_s21, %s5847_s2 }
  0x83   : > { %p4619_p3 = pnand %p4617_p2, %p4928_p7 }
  0x85   : > { %p4620_p0 = pneg %p4619_p3 }
  0x87   : > { %p4625_p4 = pnand %p4623_p1, %p4620_p0 }
  0x89   : > { %4628 = shalt.err (!%p4625_p4)
}
  0x8a   : > { %s4629_s13 = scalar_lea.vmem %s348_s25, 2048  ;;  %p4637_p10 = scmp.lt.s32.totalorder %s348_s25, %s348_s25 }
  0x8b   : > { %p4630_p6 = scmp.ne.s32.totalorder %s348_s25, %s4629_s13  ;;  %p4638_p11 = scmp.lt.s32.totalorder %s4629_s13, %s4629_s13 }
  0x8d   : > { %p4632_p8 = pnand %p4630_p6, %p4928_p7  ;;  %p4639_p12 = por %p4638_p11, %p4637_p10 }
  0x8f   : > { %p4633_p9 = pneg %p4632_p8 }
  0x91   : > { %p4640_p13 = pnand %p4639_p12, %p4633_p9 }
  0x93   : > { %4643 = shalt.err (!%p4640_p13)
}
  0x94   : > { %s5879_s1 = smov 4   ;;  %s5880_s30 = smov 64  }
  0x95   : > { %4230 = dma.hbm_to_vmem [thread:$0]  (!%p4914_p5), %s5847_s2, 2048, %s348_s25, [#allocation7], %s5880_s30, %s5880_s30, %s5879_s1  }
  0x96   : > { %s4644_s22 = scalar_lea.hbm %s5849_s4, 1024 }
  0x97   : > { %p4645_p2 = scmp.ne.s32.totalorder %s5849_s4, %s4644_s22  ;;  %p4651_p1 = scmp.lt.u32.totalorder %s4644_s22, %s5849_s4 }
  0x99   : > { %p4647_p3 = pnand %p4645_p2, %p4928_p7 }
  0x9b   : > { %p4648_p0 = pneg %p4647_p3 }
  0x9d   : > { %p4653_p4 = pnand %p4651_p1, %p4648_p0 }
  0x9f   : > { %4656 = shalt.err (!%p4653_p4)
}
  0xa0   : > { %s4657_s29 = scalar_lea.vmem %s374_s26, 1024  ;;  %p4665_p10 = scmp.lt.s32.totalorder %s374_s26, %s374_s26 }
  0xa1   : > { %p4658_p6 = scmp.ne.s32.totalorder %s374_s26, %s4657_s29  ;;  %p4666_p11 = scmp.lt.s32.totalorder %s4657_s29, %s4657_s29 }
  0xa3   : > { %p4660_p8 = pnand %p4658_p6, %p4928_p7  ;;  %p4667_p12 = por %p4666_p11, %p4665_p10 }
  0xa5   : > { %p4661_p9 = pneg %p4660_p8 }
  0xa7   : > { %p4668_p13 = pnand %p4667_p12, %p4661_p9 }
  0xa9   : > { %4671 = shalt.err (!%p4668_p13)
}
  0xaa   : > { %4236 = dma.hbm_to_vmem [thread:$0]  (!%p4914_p5), %s5849_s4, 1024, %s374_s26, [#allocation10], %s5880_s30, %s5880_s30, %s5879_s1  }
  0xab   : > { %s4812_s13 = smov [#allocation14]   ;;  %s4813_s6 = smov [#allocation15]  }
  0xac   : > { %s402_s3 = sshll.u32 %s4812_s13, 4  ;;  %s418_s12 = sshll.u32 %s4813_s6, 4  ;;  %s403_s3 = int_to_ptr.vmem [resolvable:$true] %s402_s3  ;;  %s419_s12 = int_to_ptr.vmem [resolvable:$true] %s418_s12 }
  0xad   : > { %s4672_s14 = scalar_lea.hbm %s5852_s7, 1024 }
  0xae   : > { %p4673_p2 = scmp.ne.s32.totalorder %s5852_s7, %s4672_s14  ;;  %p4679_p1 = scmp.lt.u32.totalorder %s4672_s14, %s5852_s7 }
  0xb0   : > { %p4675_p3 = pnand %p4673_p2, %p4928_p7 }
  0xb2   : > { %p4676_p0 = pneg %p4675_p3 }
  0xb4   : > { %p4681_p4 = pnand %p4679_p1, %p4676_p0 }
  0xb6   : > { %4684 = shalt.err (!%p4681_p4)
}
  0xb7   : > { %s4685_s26 = scalar_lea.vmem %s403_s3, 1024  ;;  %p4693_p10 = scmp.lt.s32.totalorder %s403_s3, %s403_s3 }
  0xb8   : > { %p4686_p6 = scmp.ne.s32.totalorder %s403_s3, %s4685_s26  ;;  %p4694_p11 = scmp.lt.s32.totalorder %s4685_s26, %s4685_s26 }
  0xba   : > { %p4688_p8 = pnand %p4686_p6, %p4928_p7  ;;  %p4695_p12 = por %p4694_p11, %p4693_p10 }
  0xbc   : > { %p4689_p9 = pneg %p4688_p8 }
  0xbe   : > { %p4696_p13 = pnand %p4695_p12, %p4689_p9 }
  0xc0   : > { %4699 = shalt.err (!%p4696_p13)
}
  0xc1   : > { %4242 = dma.hbm_to_vmem [thread:$0]  (!%p4914_p5), %s5852_s7, 1024, %s403_s3, [#allocation13], %s5880_s30, %s5880_s30, %s5879_s1  }
  0xc2   : > { %s4700_s11 = scalar_lea.hbm %s5854_s9, 1024 }
  0xc3   : > { %p4701_p2 = scmp.ne.s32.totalorder %s5854_s9, %s4700_s11  ;;  %p4707_p1 = scmp.lt.u32.totalorder %s4700_s11, %s5854_s9 }
  0xc5   : > { %p4703_p3 = pnand %p4701_p2, %p4928_p7 }
  0xc7   : > { %p4704_p0 = pneg %p4703_p3 }
  0xc9   : > { %p4709_p4 = pnand %p4707_p1, %p4704_p0 }
  0xcb   : > { %4712 = shalt.err (!%p4709_p4)
}
  0xcc   : > { %s4713_s28 = scalar_lea.vmem %s419_s12, 1024  ;;  %p4721_p10 = scmp.lt.s32.totalorder %s419_s12, %s419_s12 }
  0xcd   : > { %p4714_p6 = scmp.ne.s32.totalorder %s419_s12, %s4713_s28  ;;  %p4722_p11 = scmp.lt.s32.totalorder %s4713_s28, %s4713_s28 }
  0xcf   : > { %p4716_p8 = pnand %p4714_p6, %p4928_p7  ;;  %p4723_p12 = por %p4722_p11, %p4721_p10 }
  0xd1   : > { %p4717_p9 = pneg %p4716_p8 }
  0xd3   : > { %p4724_p13 = pnand %p4723_p12, %p4717_p9 }
  0xd5   : > { %4727 = shalt.err (!%p4724_p13)
}
  0xd6   : > { %4245 = dma.hbm_to_vmem [thread:$0]  (!%p4914_p5), %s5854_s9, 1024, %s419_s12, [#allocation16], %s5880_s30, %s5880_s30, %s5879_s1  }
  0xd7   : > { %p5881_p2 = scmp.ne.s32.totalorder %s5873_s24, 0 }
  0xd8   : > { %p5882_p7 = scmp.ne.s32.totalorder (!%p5881_p2), %s5872_s23, 0 }
  0xd9   : > { %437 = sbr.rel (%p5881_p2) target bundleno = 1989 (0x7c5), region = 64 }
  0xe0   : > { %4767 = dma.done.wait (%p5882_p7), [#allocation4], 4096  }
  0xe1   : > { %4769 = vsyncadd (%p5882_p7), [#allocation4], 4294963200 }
  0xe2   : > { %4771 = dma.done.wait (%p5882_p7), [#allocation7], 4096  }
  0xe3   : > { %4773 = vsyncadd (%p5882_p7), [#allocation7], 4294963200 }
  0xe4   : > { %4775 = dma.done.wait (%p5882_p7), [#allocation10], 2048  }
  0xe5   : > { %4777 = vsyncadd (%p5882_p7), [#allocation10], 4294965248 }
  0xe6   : > { %4779 = dma.done.wait (%p5882_p7), [#allocation13], 2048  }
  0xe7   : > { %4781 = vsyncadd (%p5882_p7), [#allocation13], 4294965248 }
  0xe8   : > { %4783 = dma.done.wait (%p5882_p7), [#allocation16], 1024  }
  0xe9   : > { %4785 = vsyncadd (%p5882_p7), [#allocation16], 4294966272  ;;  %v5131_v0 = vld [vmem:[#allocation3] sm:$0xff]  ;;  %v5133_v1 = vld [vmem:[#allocation3 + $0x8] sm:$0xff]  ;;  %p3376_p5 = scmp.ne.s32.totalorder %s4792_s17, 0 }
  0xea   : > { %v5135_v2 = vld [vmem:[#allocation3 + $0x10] sm:$0xff]  ;;  %v5137_v3 = vld [vmem:[#allocation3 + $0x18] sm:$0xff]  ;;  %v5139_v4 = vld [vmem:[#allocation3 + $0x20] sm:$0xff]  ;;  %v3378_v33 = vcombine.high (!%p3376_p5), %v5131_v0, %v5133_v1  ;;  %v3377_v52 = vcombine.low (!%p3376_p5), %v5131_v0, %v5133_v1 }
  0xeb   : > { %v5141_v5 = vld [vmem:[#allocation3 + $0x28] sm:$0xff]  ;;  %v5143_v6 = vld [vmem:[#allocation3 + $0x30] sm:$0xff]  ;;  %v5145_v7 = vld [vmem:[#allocation3 + $0x38] sm:$0xff]  ;;  %v3380_v54 = vcombine.high (!%p3376_p5), %v5135_v2, %v5137_v3  ;;  %v3379_v56 = vcombine.low (!%p3376_p5), %v5135_v2, %v5137_v3 }
  0xec   : > { %v5147_v8 = vld [vmem:[#allocation3 + $0x40] sm:$0xff]  ;;  %v5149_v9 = vld [vmem:[#allocation3 + $0x48] sm:$0xff]  ;;  %v5151_v10 = vld [vmem:[#allocation3 + $0x50] sm:$0xff]  ;;  %860 = vmatprep.mubr.bf16.mxu0 (!%p3376_p5), %v3378_v33  ;;  %v3382_v58 = vcombine.high (!%p3376_p5), %v5139_v4, %v5141_v5  ;;  %v3381_v60 = vcombine.low (!%p3376_p5), %v5139_v4, %v5141_v5  ;;  %v3384_v62 = vcombine.high (!%p3376_p5), %v5143_v6, %v5145_v7 }
  0xed   : > { %v5153_v11 = vld [vmem:[#allocation3 + $0x58] sm:$0xff]  ;;  %v5155_v12 = vld [vmem:[#allocation3 + $0x60] sm:$0xff]  ;;  %v5157_v13 = vld [vmem:[#allocation3 + $0x68] sm:$0xff]  ;;  %539 = sbr.rel (%p3376_p5) target bundleno = 838 (0x346), region = 100 }
  0xee   : > { %v5159_v14 = vld [vmem:[#allocation3 + $0x70] sm:$0xff]  ;;  %v5161_v15 = vld [vmem:[#allocation3 + $0x78] sm:$0xff]  ;;  %v5163_v16 = vld [vmem:[#allocation3 + $0x80] sm:$0xff] }
  0xef   : > { %v5165_v17 = vld [vmem:[#allocation3 + $0x88] sm:$0xff]  ;;  %v5167_v18 = vld [vmem:[#allocation3 + $0x90] sm:$0xff]  ;;  %v5169_v19 = vld [vmem:[#allocation3 + $0x98] sm:$0xff] }
  0xf0   : > { %v5171_v20 = vld [vmem:[#allocation3 + $0xa0] sm:$0xff]  ;;  %v5173_v21 = vld [vmem:[#allocation3 + $0xa8] sm:$0xff]  ;;  %v5175_v22 = vld [vmem:[#allocation3 + $0xb0] sm:$0xff] }
  0xf1   : > { %v5177_v23 = vld [vmem:[#allocation3 + $0xb8] sm:$0xff]  ;;  %v5179_v24 = vld [vmem:[#allocation3 + $0xc0] sm:$0xff]  ;;  %v5181_v25 = vld [vmem:[#allocation3 + $0xc8] sm:$0xff] }
  0xf2   : > { %v5183_v26 = vld [vmem:[#allocation3 + $0xd0] sm:$0xff]  ;;  %v5185_v27 = vld [vmem:[#allocation3 + $0xd8] sm:$0xff]  ;;  %v5187_v28 = vld [vmem:[#allocation3 + $0xe0] sm:$0xff] }
  0xf3   : > { %v5189_v29 = vld [vmem:[#allocation3 + $0xe8] sm:$0xff]  ;;  %v5191_v30 = vld [vmem:[#allocation3 + $0xf0] sm:$0xff]  ;;  %v5193_v31 = vld [vmem:[#allocation3 + $0xf8] sm:$0xff] }
  0xf4   : > { %v4304_v32 = vld [vmem:[#allocation6 + $0x40] sm:$0xff]   ;;  %v4306_v35 = vld [vmem:[#allocation6 + $0x48] sm:$0xff]   ;;  %v4308_v37 = vld [vmem:[#allocation6 + $0x50] sm:$0xff]  }
  0xf5   : > { %v4305_v34 = vld [vmem:[#allocation6] sm:$0xff]   ;;  %3521 = vmatprep.subr.bf16.mxu0 %v4304_v32  ;;  %v4307_v36 = vld [vmem:[#allocation6 + $0x8] sm:$0xff]   ;;  %v4309_v38 = vld [vmem:[#allocation6 + $0x10] sm:$0xff]   ;;  %v3383_v32 = vcombine.low %v5143_v6, %v5145_v7 }
  0xf6   : > { %3522 = vmatpush3.bf16.msra.mxu0 %v4305_v34  ;;  %v4310_v39 = vld [vmem:[#allocation6 + $0x58] sm:$0xff]   ;;  %v4312_v41 = vld [vmem:[#allocation6 + $0x60] sm:$0xff]   ;;  %v4314_v43 = vld [vmem:[#allocation6 + $0x68] sm:$0xff]   ;;  %v3386_v34 = vcombine.high %v5147_v8, %v5149_v9 }
  0xf7   : > { %3523 = vmatprep.subr.bf16.mxu0 %v4306_v35  ;;  %v4311_v40 = vld [vmem:[#allocation6 + $0x18] sm:$0xff]   ;;  %v4313_v42 = vld [vmem:[#allocation6 + $0x20] sm:$0xff]   ;;  %v4315_v44 = vld [vmem:[#allocation6 + $0x28] sm:$0xff]  }
  0xf8   : > { %v4316_v45 = vld [vmem:[#allocation6 + $0x70] sm:$0xff]   ;;  %v4318_v47 = vld [vmem:[#allocation6 + $0x78] sm:$0xff]   ;;  %v4320_v48 = vld [vmem:[#allocation11] sm:$0xff]  }
  0xf9   : > { %v4317_v46 = vld [vmem:[#allocation6 + $0x30] sm:$0xff]   ;;  %v4321_v49 = vld [vmem:[#allocation11 + $0x8] sm:$0xff]   ;;  %v4319_v50 = vld [vmem:[#allocation6 + $0x38] sm:$0xff]   ;;  %3865 = vmatprep.subr.bf16.mxu1 %v4320_v48 }
  0xfa   : > { %3524 = vmatpush3.bf16.msra.mxu0 %v4307_v36  ;;  %v4328_v51 = vld [vmem:[#allocation8] sm:$0xff]   ;;  %3866 = vmatpush3.bf16.msra.mxu1 %v4320_v48  ;;  %v4322_v53 = vld [vmem:[#allocation11 + $0x10] sm:$0xff]   ;;  %v4323_v55 = vld [vmem:[#allocation11 + $0x18] sm:$0xff]   ;;  %v3389_v48 = vcombine.low %v5155_v12, %v5157_v13 }
  0xfb   : > { %3525 = vmatprep.subr.bf16.mxu0 %v4308_v37  ;;  %3867 = vmatprep.subr.bf16.mxu1 %v4321_v49  ;;  %v4324_v57 = vld [vmem:[#allocation11 + $0x20] sm:$0xff]   ;;  %v4325_v59 = vld [vmem:[#allocation11 + $0x28] sm:$0xff]   ;;  %v4326_v61 = vld [vmem:[#allocation11 + $0x30] sm:$0xff]  }
  0xfc   : > { %3881 = vmatprep.mubr.bf16.mxu1 %v4328_v51  ;;  %v4327_v63 = vld [vmem:[#allocation11 + $0x38] sm:$0xff]   ;;  %v4338_v33 = vld [vmem:[#allocation9] sm:$0xff]   ;;  %v4329_v35 = vld [vmem:[#allocation8 + $0x8] sm:$0xff]  }
  0xfd   : > { %v4330_v36 = vld [vmem:[#allocation8 + $0x10] sm:$0xff]   ;;  %v4339_v37 = vld [vmem:[#allocation9 + $0x8] sm:$0xff]   ;;  %v4336_v51 = vld [vmem:[#allocation8 + $0x40] sm:$0xff]  }
  0xfe   : > { %3526 = vmatpush3.bf16.msra.mxu0 %v4309_v38  ;;  %3868 = vmatpush3.bf16.msra.mxu1 %v4321_v49  ;;  %v3385_v38 = vcombine.low %v5147_v8, %v5149_v9  ;;  %v3392_v49 = vcombine.high %v5159_v14, %v5161_v15 }
  0xff   : > { %3527 = vmatprep.subr.bf16.mxu0 %v4310_v39  ;;  %3869 = vmatprep.subr.bf16.mxu1 %v4322_v53  ;;  %v4342_v39 = vld [vmem:[#allocation9 + $0x10] sm:$0xff]  }
 0x102   : > { %3528 = vmatpush3.bf16.msra.mxu0 %v4311_v40  ;;  %3870 = vmatpush3.bf16.msra.mxu1 %v4322_v53  ;;  %v3388_v40 = vcombine.high %v5151_v10, %v5153_v11  ;;  %v3394_v53 = vcombine.high %v5163_v16, %v5165_v17 }
 0x103   : > { %3529 = vmatprep.subr.bf16.mxu0 %v4312_v41  ;;  %3871 = vmatprep.subr.bf16.mxu1 %v4323_v55  ;;  %v4331_v41 = vld [vmem:[#allocation8 + $0x18] sm:$0xff]  }
 0x106   : > { %3530 = vmatpush3.bf16.msra.mxu0 %v4313_v42  ;;  %3872 = vmatpush3.bf16.msra.mxu1 %v4323_v55  ;;  %v4332_v42 = vld [vmem:[#allocation8 + $0x20] sm:$0xff]   ;;  %v4340_v55 = vld [vmem:[#allocation8 + $0x50] sm:$0xff]  }
 0x107   : > { %3531 = vmatprep.subr.bf16.mxu0 %v4314_v43  ;;  %3873 = vmatprep.subr.bf16.mxu1 %v4324_v57  ;;  %v4343_v43 = vld [vmem:[#allocation9 + $0x18] sm:$0xff]  }
 0x10a   : > { %3532 = vmatpush3.bf16.msra.mxu0 %v4315_v44  ;;  %3874 = vmatpush3.bf16.msra.mxu1 %v4324_v57  ;;  %v3387_v44 = vcombine.low %v5151_v10, %v5153_v11  ;;  %v3396_v57 = vcombine.high %v5167_v18, %v5169_v19 }
 0x10b   : > { %3533 = vmatprep.subr.bf16.mxu0 %v4316_v45  ;;  %3875 = vmatprep.subr.bf16.mxu1 %v4325_v59  ;;  %v3390_v45 = vcombine.high %v5155_v12, %v5157_v13 }
 0x10e   : > { %3534 = vmatpush3.bf16.msra.mxu0 %v4317_v46  ;;  %3876 = vmatpush3.bf16.msra.mxu1 %v4325_v59  ;;  %v4333_v46 = vld [vmem:[#allocation8 + $0x28] sm:$0xff]   ;;  %v4344_v59 = vld [vmem:[#allocation8 + $0x60] sm:$0xff]  }
 0x10f   : > { %3535 = vmatprep.subr.bf16.mxu0 %v4318_v47  ;;  %3877 = vmatprep.subr.bf16.mxu1 %v4326_v61  ;;  %v4334_v47 = vld [vmem:[#allocation8 + $0x30] sm:$0xff]  }
 0x112   : > { %3536 = vmatpush3.bf16.msra.mxu0 %v4319_v50  ;;  %3878 = vmatpush3.bf16.msra.mxu1 %v4326_v61  ;;  %v4335_v50 = vld [vmem:[#allocation8 + $0x38] sm:$0xff]   ;;  %v3398_v61 = vcombine.high %v5171_v20, %v5173_v21 }
 0x113   : > { %3879 = vmatprep.subr.bf16.mxu1 %v4327_v63 }
 0x115   : > { %861 = vmatmul.mubr.bf16.vlgmr.msra.gmra.mrb[0].mxu0 %v3377_v52  ;;  %v3391_v52 = vcombine.low %v5159_v14, %v5161_v15 }
 0x116   : > { %868 = vmatprep.mubr.bf16.mxu0 %v3380_v54  ;;  %3880 = vmatpush3.bf16.msra.mxu1 %v4327_v63  ;;  %v4337_v54 = vld [vmem:[#allocation8 + $0x48] sm:$0xff]   ;;  %v3397_v63 = vcombine.low %v5171_v20, %v5173_v21 }
 0x117   : > { %3913 = vmatprep.subr.bf16.mxu1 %v4338_v33 }
 0x119   : > { %3882 = vmatmul.mubr.bf16.vlgmr.msra.gmra.mrb[0].mxu1 %v4329_v35  ;;  %v3402_v35 = vcombine.high %v5179_v24, %v5181_v25 }
 0x11a   : > { %3885 = vmatprep.mubr.bf16.mxu1 %v4330_v36  ;;  %3914 = vmatpush3.bf16.msra.mxu1 %v4338_v33  ;;  %v4346_v33 = vld [vmem:[#allocation9 + $0x20] sm:$0xff]   ;;  %v4347_v36 = vld [vmem:[#allocation9 + $0x28] sm:$0xff]  }
 0x11b   : > { %3915 = vmatprep.subr.bf16.mxu1 %v4339_v37 }
 0x11d   : > { %869 = vmatmul.mubr.bf16.gmra.mrb[4].mxu0 %v3379_v56  ;;  %v3393_v56 = vcombine.low %v5163_v16, %v5165_v17 }
 0x11e   : > { %876 = vmatprep.mubr.bf16.mxu0 %v3382_v58  ;;  %3916 = vmatpush3.bf16.msra.mxu1 %v4339_v37  ;;  %v4341_v58 = vld [vmem:[#allocation8 + $0x58] sm:$0xff]   ;;  %v4348_v37 = vld [vmem:[#allocation8 + $0x70] sm:$0xff]  }
 0x11f   : > { %3917 = vmatprep.subr.bf16.mxu1 %v4342_v39 }
 0x121   : > { %3886 = vmatmul.mubr.bf16.gmra.mrb[4].mxu1 %v4331_v41  ;;  %v3404_v41 = vcombine.high %v5183_v26, %v5185_v27 }
 0x122   : > { %3889 = vmatprep.mubr.bf16.mxu1 %v4332_v42  ;;  %3918 = vmatpush3.bf16.msra.mxu1 %v4342_v39  ;;  %v4350_v39 = vld [vmem:[#allocation9 + $0x30] sm:$0xff]   ;;  %v4351_v42 = vld [vmem:[#allocation9 + $0x38] sm:$0xff]  }
 0x123   : > { %3919 = vmatprep.subr.bf16.mxu1 %v4343_v43 }
 0x125   : > { %877 = vmatmul.mubr.bf16.gmra.mrb[8].mxu0 %v3381_v60  ;;  %v3395_v60 = vcombine.low %v5167_v18, %v5169_v19 }
 0x126   : > { %884 = vmatprep.mubr.bf16.mxu0 %v3384_v62  ;;  %3920 = vmatpush3.bf16.msra.mxu1 %v4343_v43  ;;  %v4345_v62 = vld [vmem:[#allocation8 + $0x68] sm:$0xff]   ;;  %v3403_v43 = vcombine.low %v5183_v26, %v5185_v27 }
 0x127   : > { %3921 = vmatprep.subr.bf16.mxu1 %v4346_v33 }
 0x129   : > { %3890 = vmatmul.mubr.bf16.gmra.mrb[8].mxu1 %v4333_v46  ;;  %v3408_v46 = vcombine.high %v5191_v30, %v5193_v31 }
 0x12a   : > { %3893 = vmatprep.mubr.bf16.mxu1 %v4334_v47  ;;  %3922 = vmatpush3.bf16.msra.mxu1 %v4346_v33  ;;  %v3407_v47 = vcombine.low %v5191_v30, %v5193_v31 }
 0x12b   : > { %3923 = vmatprep.subr.bf16.mxu1 %v4347_v36 }
 0x12d   : > { %885 = vmatmul.mubr.bf16.gmra.mrb[12].mxu0 %v3383_v32  ;;  %v3400_v32 = vcombine.high %v5175_v22, %v5177_v23 }
 0x12e   : > { %892 = vmatprep.mubr.bf16.mxu0 %v3386_v34  ;;  %v3399_v34 = vcombine.low %v5175_v22, %v5177_v23  ;;  %3924 = vmatpush3.bf16.msra.mxu1 %v4347_v36 }
 0x12f   : > { %3925 = vmatprep.subr.bf16.mxu1 %v4350_v39 }
 0x131   : > { %3894 = vmatmul.mubr.bf16.gmra.mrb[12].mxu1 %v4335_v50 }
 0x132   : > { %3897 = vmatprep.mubr.bf16.mxu1 %v4336_v51  ;;  %3926 = vmatpush3.bf16.msra.mxu1 %v4350_v39 }
 0x133   : > { %3927 = vmatprep.subr.bf16.mxu1 %v4351_v42 }
 0x135   : > { %893 = vmatmul.mubr.bf16.gmra.mrb[16].mxu0 %v3385_v38  ;;  %v4349_v38 = vld [vmem:[#allocation8 + $0x78] sm:$0xff]  }
 0x136   : > { %900 = vmatprep.mubr.bf16.mxu0 %v3388_v40  ;;  %v3401_v40 = vcombine.low %v5179_v24, %v5181_v25  ;;  %3928 = vmatpush3.bf16.msra.mxu1 %v4351_v42 }
 0x139   : > { %3898 = vmatmul.mubr.bf16.gmra.mrb[16].mxu1 %v4337_v54 }
 0x13a   : > { %3901 = vmatprep.mubr.bf16.mxu1 %v4340_v55 }
 0x13d   : > { %901 = vmatmul.mubr.bf16.gmra.mrb[20].mxu0 %v3387_v44  ;;  %v3406_v44 = vcombine.high %v5187_v28, %v5189_v29 }
 0x13e   : > { %908 = vmatprep.mubr.bf16.mxu0 %v3390_v45  ;;  %v3405_v45 = vcombine.low %v5187_v28, %v5189_v29 }
 0x141   : > { %3902 = vmatmul.mubr.bf16.gmra.mrb[20].mxu1 %v4341_v58 }
 0x142   : > { %3905 = vmatprep.mubr.bf16.mxu1 %v4344_v59 }
 0x145   : > { %909 = vmatmul.mubr.bf16.gmra.mrb[24].mxu0 %v3389_v48 }
 0x146   : > { %916 = vmatprep.mubr.bf16.mxu0 %v3392_v49 }
 0x149   : > { %3906 = vmatmul.mubr.bf16.gmra.mrb[24].mxu1 %v4345_v62 }
 0x14a   : > { %3909 = vmatprep.mubr.bf16.mxu1 %v4348_v37 }
 0x14d   : > { %917 = vmatmul.mubr.bf16.gmra.mrb[28].mxu0 %v3391_v52 }
 0x14e   : > { %924 = vmatprep.mubr.bf16.mxu0 %v3394_v53 }
 0x151   : > { %3910 = vmatmul.mubr.bf16.gmra.mrb[28].mxu1 %v4349_v38 }
 0x155   : > { %925 = vmatmul.mubr.bf16.gmra.mrb[32].mxu0 %v3393_v56 }
 0x156   : > { %932 = vmatprep.mubr.bf16.mxu0 %v3396_v57 }
 0x15d   : > { %933 = vmatmul.mubr.bf16.gmra.mrb[36].mxu0 %v3395_v60 }
 0x15e   : > { %940 = vmatprep.mubr.bf16.mxu0 %v3398_v61 }
 0x165   : > { %941 = vmatmul.mubr.bf16.gmra.mrb[40].mxu0 %v3397_v63 }
 0x166   : > { %948 = vmatprep.mubr.bf16.mxu0 %v3400_v32 }
 0x16d   : > { %949 = vmatmul.mubr.bf16.gmra.mrb[44].mxu0 %v3399_v34 }
 0x16e   : > { %956 = vmatprep.mubr.bf16.mxu0 %v3402_v35 }
 0x175   : > { %957 = vmatmul.mubr.bf16.gmra.mrb[48].mxu0 %v3401_v40 }
 0x176   : > { %964 = vmatprep.mubr.bf16.mxu0 %v3404_v41 }
 0x17d   : > { %965 = vmatmul.mubr.bf16.gmra.mrb[52].mxu0 %v3403_v43 }
 0x17e   : > { %972 = vmatprep.mubr.bf16.mxu0 %v3406_v44 }
 0x185   : > { %973 = vmatmul.mubr.bf16.gmra.mrb[56].mxu0 %v3405_v45 }
 0x186   : > { %980 = vmatprep.mubr.bf16.mxu0 %v3408_v46 }
 0x18d   : > { %981 = vmatmul.mubr.bf16.gmra.mrb[60].mxu0 %v3407_v47 }
 0x1e8   : > { %v3537_v48 = vpop.f32.mrb[0].mxu0 }
 0x1e9   : > { %v3538_v49 = vpop.f32.mrb[1].mxu0 }
 0x1ea   : > { %v3539_v50 = vadd.f32 %v3538_v49, %v3537_v48  ;;  %v3540_v51 = vpop.f32.mrb[2].mxu0 }
 0x1eb   : > { %v3541_v52 = vpop.f32.mrb[3].mxu0 }
 0x1ec   : > { %v3542_v53 = vadd.f32 %v3541_v52, %v3540_v51 }
 0x1ee   : > { %v989_v54 = vpack.c.bf16 %v3542_v53, %v3539_v50 }
 0x1f0   : > { %v3543_v55 = vpop.f32.mrb[4].mxu0  ;;  %3929 = vmatprep.mubr.bf16.mxu1 %v989_v54 }
 0x1f1   : > { %v3544_v56 = vpop.f32.mrb[5].mxu0 }
 0x1f2   : > { %v3545_v57 = vadd.f32 %v3544_v56, %v3543_v55  ;;  %v3546_v58 = vpop.f32.mrb[6].mxu0 }
 0x1f3   : > { %v3547_v59 = vpop.f32.mrb[7].mxu0 }
 0x1f4   : > { %v3548_v60 = vadd.f32 %v3547_v59, %v3546_v58 }
 0x1f6   : > { %v990_v61 = vpack.c.bf16 %v3548_v60, %v3545_v57 }
 0x1f8   : > { %v3549_v62 = vpop.f32.mrb[8].mxu0  ;;  %3930 = vmatmul.mubr.bf16.vlgmr.msra.gmra.mrb[0].mxu1 %v990_v61 }
 0x1f9   : > { %v3550_v63 = vpop.f32.mrb[9].mxu0 }
 0x1fa   : > { %v3551_v32 = vadd.f32 %v3550_v63, %v3549_v62  ;;  %v3552_v33 = vpop.f32.mrb[10].mxu0 }
 0x1fb   : > { %v3553_v34 = vpop.f32.mrb[11].mxu0 }
 0x1fc   : > { %v3554_v35 = vadd.f32 %v3553_v34, %v3552_v33 }
 0x1fe   : > { %v991_v36 = vpack.c.bf16 %v3554_v35, %v3551_v32 }
 0x200   : > { %v3555_v37 = vpop.f32.mrb[12].mxu0  ;;  %3933 = vmatprep.mubr.bf16.mxu1 %v991_v36 }
 0x201   : > { %v3556_v38 = vpop.f32.mrb[13].mxu0 }
 0x202   : > { %v3557_v39 = vadd.f32 %v3556_v38, %v3555_v37  ;;  %v3558_v40 = vpop.f32.mrb[14].mxu0 }
 0x203   : > { %v3559_v41 = vpop.f32.mrb[15].mxu0 }
 0x204   : > { %v3560_v42 = vadd.f32 %v3559_v41, %v3558_v40 }
 0x206   : > { %v992_v43 = vpack.c.bf16 %v3560_v42, %v3557_v39 }
 0x208   : > { %v3561_v44 = vpop.f32.mrb[16].mxu0  ;;  %3934 = vmatmul.mubr.bf16.gmra.mrb[4].mxu1 %v992_v43 }
 0x209   : > { %v3562_v45 = vpop.f32.mrb[17].mxu0 }
 0x20a   : > { %v3563_v46 = vadd.f32 %v3562_v45, %v3561_v44  ;;  %v3564_v47 = vpop.f32.mrb[18].mxu0 }
 0x20b   : > { %v3565_v48 = vpop.f32.mrb[19].mxu0 }
 0x20c   : > { %v3566_v49 = vadd.f32 %v3565_v48, %v3564_v47 }
 0x20e   : > { %v993_v50 = vpack.c.bf16 %v3566_v49, %v3563_v46 }
 0x210   : > { %v3567_v51 = vpop.f32.mrb[20].mxu0  ;;  %3937 = vmatprep.mubr.bf16.mxu1 %v993_v50 }
 0x211   : > { %v3568_v52 = vpop.f32.mrb[21].mxu0 }
 0x212   : > { %v3569_v53 = vadd.f32 %v3568_v52, %v3567_v51  ;;  %v3570_v54 = vpop.f32.mrb[22].mxu0 }
 0x213   : > { %v3571_v55 = vpop.f32.mrb[23].mxu0 }
 0x214   : > { %v3572_v56 = vadd.f32 %v3571_v55, %v3570_v54 }
 0x216   : > { %v994_v57 = vpack.c.bf16 %v3572_v56, %v3569_v53 }
 0x218   : > { %v3573_v58 = vpop.f32.mrb[24].mxu0  ;;  %3938 = vmatmul.mubr.bf16.gmra.mrb[8].mxu1 %v994_v57 }
 0x219   : > { %v3574_v59 = vpop.f32.mrb[25].mxu0 }
 0x21a   : > { %v3575_v60 = vadd.f32 %v3574_v59, %v3573_v58  ;;  %v3576_v61 = vpop.f32.mrb[26].mxu0 }
 0x21b   : > { %v3577_v62 = vpop.f32.mrb[27].mxu0 }
 0x21c   : > { %v3578_v63 = vadd.f32 %v3577_v62, %v3576_v61 }
 0x21e   : > { %v995_v32 = vpack.c.bf16 %v3578_v63, %v3575_v60 }
 0x220   : > { %v3579_v33 = vpop.f32.mrb[28].mxu0  ;;  %3941 = vmatprep.mubr.bf16.mxu1 %v995_v32 }
 0x221   : > { %v3580_v34 = vpop.f32.mrb[29].mxu0 }
 0x222   : > { %v3581_v35 = vadd.f32 %v3580_v34, %v3579_v33  ;;  %v3582_v36 = vpop.f32.mrb[30].mxu0 }
 0x223   : > { %v3583_v37 = vpop.f32.mrb[31].mxu0 }
 0x224   : > { %v3584_v38 = vadd.f32 %v3583_v37, %v3582_v36 }
 0x226   : > { %v996_v39 = vpack.c.bf16 %v3584_v38, %v3581_v35 }
 0x228   : > { %v3585_v40 = vpop.f32.mrb[32].mxu0  ;;  %3942 = vmatmul.mubr.bf16.gmra.mrb[12].mxu1 %v996_v39 }
 0x229   : > { %v3586_v41 = vpop.f32.mrb[33].mxu0 }
 0x22a   : > { %v3587_v42 = vadd.f32 %v3586_v41, %v3585_v40  ;;  %v3588_v43 = vpop.f32.mrb[34].mxu0 }
 0x22b   : > { %v3589_v44 = vpop.f32.mrb[35].mxu0 }
 0x22c   : > { %v3590_v45 = vadd.f32 %v3589_v44, %v3588_v43 }
 0x22e   : > { %v997_v46 = vpack.c.bf16 %v3590_v45, %v3587_v42 }
 0x230   : > { %v3591_v47 = vpop.f32.mrb[36].mxu0  ;;  %3945 = vmatprep.mubr.bf16.mxu1 %v997_v46 }
 0x231   : > { %v3592_v48 = vpop.f32.mrb[37].mxu0 }
 0x232   : > { %v3593_v49 = vadd.f32 %v3592_v48, %v3591_v47  ;;  %v3594_v50 = vpop.f32.mrb[38].mxu0 }
 0x233   : > { %v3595_v51 = vpop.f32.mrb[39].mxu0 }
 0x234   : > { %v3596_v52 = vadd.f32 %v3595_v51, %v3594_v50 }
 0x236   : > { %v998_v53 = vpack.c.bf16 %v3596_v52, %v3593_v49 }
 0x238   : > { %v3597_v54 = vpop.f32.mrb[40].mxu0  ;;  %3946 = vmatmul.mubr.bf16.gmra.mrb[16].mxu1 %v998_v53 }
 0x239   : > { %v3598_v55 = vpop.f32.mrb[41].mxu0 }
 0x23a   : > { %v3599_v56 = vadd.f32 %v3598_v55, %v3597_v54  ;;  %v3600_v57 = vpop.f32.mrb[42].mxu0 }
 0x23b   : > { %v3601_v58 = vpop.f32.mrb[43].mxu0 }
 0x23c   : > { %v3602_v59 = vadd.f32 %v3601_v58, %v3600_v57 }
 0x23e   : > { %v999_v60 = vpack.c.bf16 %v3602_v59, %v3599_v56 }
 0x240   : > { %v3603_v61 = vpop.f32.mrb[44].mxu0  ;;  %3949 = vmatprep.mubr.bf16.mxu1 %v999_v60 }
 0x241   : > { %v3604_v62 = vpop.f32.mrb[45].mxu0 }
 0x242   : > { %v3605_v63 = vadd.f32 %v3604_v62, %v3603_v61  ;;  %v3606_v32 = vpop.f32.mrb[46].mxu0 }
 0x243   : > { %v3607_v33 = vpop.f32.mrb[47].mxu0 }
 0x244   : > { %v3608_v34 = vadd.f32 %v3607_v33, %v3606_v32  ;;  %v4814_v32 = vmov 0.0   ;;  %v5263_v33 = vld [vmem:[%s5850_s5] ss:$0 sm:$0xff] }
 0x245   : > { %1690 = vst [vmem:[#allocation17] sm:$0xff] %v4814_v32  ;;  %1691 = vst [vmem:[#allocation17 + $0x8] sm:$0xff] %v4814_v32 }
 0x246   : > { %v1000_v35 = vpack.c.bf16 %v3608_v34, %v3605_v63  ;;  %1692 = vst [vmem:[#allocation17 + $0x10] sm:$0xff] %v4814_v32  ;;  %1693 = vst [vmem:[#allocation17 + $0x18] sm:$0xff] %v4814_v32 }
 0x247   : > { %1694 = vst [vmem:[#allocation17 + $0x20] sm:$0xff] %v4814_v32  ;;  %1695 = vst [vmem:[#allocation17 + $0x28] sm:$0xff] %v4814_v32 }
 0x248   : > { %v3609_v36 = vpop.f32.mrb[48].mxu0  ;;  %3950 = vmatmul.mubr.bf16.gmra.mrb[20].mxu1 %v1000_v35  ;;  %1696 = vst [vmem:[#allocation17 + $0x30] sm:$0xff] %v4814_v32  ;;  %1697 = vst [vmem:[#allocation17 + $0x38] sm:$0xff] %v4814_v32 }
 0x249   : > { %v3610_v37 = vpop.f32.mrb[49].mxu0  ;;  %1698 = vst [vmem:[#allocation17 + $0x40] sm:$0xff] %v4814_v32  ;;  %1699 = vst [vmem:[#allocation17 + $0x48] sm:$0xff] %v4814_v32 }
 0x24a   : > { %v3611_v38 = vadd.f32 %v3610_v37, %v3609_v36  ;;  %v3612_v39 = vpop.f32.mrb[50].mxu0  ;;  %1700 = vst [vmem:[#allocation17 + $0x50] sm:$0xff] %v4814_v32  ;;  %1701 = vst [vmem:[#allocation17 + $0x58] sm:$0xff] %v4814_v32 }
 0x24b   : > { %v3613_v40 = vpop.f32.mrb[51].mxu0  ;;  %1702 = vst [vmem:[#allocation17 + $0x60] sm:$0xff] %v4814_v32  ;;  %1703 = vst [vmem:[#allocation17 + $0x68] sm:$0xff] %v4814_v32 }
 0x24c   : > { %v3614_v41 = vadd.f32 %v3613_v40, %v3612_v39  ;;  %1704 = vst [vmem:[#allocation17 + $0x70] sm:$0xff] %v4814_v32  ;;  %1705 = vst [vmem:[#allocation17 + $0x78] sm:$0xff] %v4814_v32 }
 0x24d   : > { %1706 = vst [vmem:[#allocation17 + $0x80] sm:$0xff] %v4814_v32  ;;  %1707 = vst [vmem:[#allocation17 + $0x88] sm:$0xff] %v4814_v32 }
 0x24e   : > { %v1001_v42 = vpack.c.bf16 %v3614_v41, %v3611_v38  ;;  %1708 = vst [vmem:[#allocation17 + $0x90] sm:$0xff] %v4814_v32  ;;  %1709 = vst [vmem:[#allocation17 + $0x98] sm:$0xff] %v4814_v32 }
 0x24f   : > { %1710 = vst [vmem:[#allocation17 + $0xa0] sm:$0xff] %v4814_v32  ;;  %1711 = vst [vmem:[#allocation17 + $0xa8] sm:$0xff] %v4814_v32 }
 0x250   : > { %v3615_v43 = vpop.f32.mrb[52].mxu0  ;;  %3953 = vmatprep.mubr.bf16.mxu1 %v1001_v42  ;;  %1712 = vst [vmem:[#allocation17 + $0xb0] sm:$0xff] %v4814_v32  ;;  %1713 = vst [vmem:[#allocation17 + $0xb8] sm:$0xff] %v4814_v32 }
 0x251   : > { %v3616_v44 = vpop.f32.mrb[53].mxu0  ;;  %1714 = vst [vmem:[#allocation17 + $0xc0] sm:$0xff] %v4814_v32  ;;  %1715 = vst [vmem:[#allocation17 + $0xc8] sm:$0xff] %v4814_v32 }
 0x252   : > { %v3617_v45 = vadd.f32 %v3616_v44, %v3615_v43  ;;  %v3618_v46 = vpop.f32.mrb[54].mxu0  ;;  %1716 = vst [vmem:[#allocation17 + $0xd0] sm:$0xff] %v4814_v32  ;;  %1717 = vst [vmem:[#allocation17 + $0xd8] sm:$0xff] %v4814_v32 }
 0x253   : > { %v3619_v47 = vpop.f32.mrb[55].mxu0  ;;  %1718 = vst [vmem:[#allocation17 + $0xe0] sm:$0xff] %v4814_v32  ;;  %1719 = vst [vmem:[#allocation17 + $0xe8] sm:$0xff] %v4814_v32 }
 0x254   : > { %v3620_v48 = vadd.f32 %v3619_v47, %v3618_v46  ;;  %1720 = vst [vmem:[#allocation17 + $0xf0] sm:$0xff] %v4814_v32  ;;  %1721 = vst [vmem:[#allocation17 + $0xf8] sm:$0xff] %v4814_v32 }
 0x256   : > { %v1002_v49 = vpack.c.bf16 %v3620_v48, %v3617_v45 }
 0x258   : > { %v3621_v50 = vpop.f32.mrb[56].mxu0  ;;  %3954 = vmatmul.mubr.bf16.gmra.mrb[24].mxu1 %v1002_v49 }
 0x259   : > { %v3622_v51 = vpop.f32.mrb[57].mxu0 }
 0x25a   : > { %v3623_v52 = vadd.f32 %v3622_v51, %v3621_v50  ;;  %v3624_v53 = vpop.f32.mrb[58].mxu0 }
 0x25b   : > { %v3625_v54 = vpop.f32.mrb[59].mxu0 }
 0x25c   : > { %v3626_v55 = vadd.f32 %v3625_v54, %v3624_v53 }
 0x25e   : > { %v1003_v56 = vpack.c.bf16 %v3626_v55, %v3623_v52 }
 0x260   : > { %v3627_v57 = vpop.f32.mrb[60].mxu0  ;;  %3957 = vmatprep.mubr.bf16.mxu1 %v1003_v56 }
 0x261   : > { %v3628_v58 = vpop.f32.mrb[61].mxu0 }
 0x262   : > { %v3629_v59 = vadd.f32 %v3628_v58, %v3627_v57  ;;  %v3630_v60 = vpop.f32.mrb[62].mxu0 }
 0x263   : > { %v3631_v61 = vpop.f32.mrb[63].mxu0 }
 0x264   : > { %v3632_v62 = vadd.f32 %v3631_v61, %v3630_v60 }
 0x266   : > { %v1004_v63 = vpack.c.bf16 %v3632_v62, %v3629_v59 }
 0x268   : > { %3958 = vmatmul.mubr.bf16.gmra.mrb[28].mxu1 %v1004_v63 }
 0x2cb   : > { %v3931_v34 = vpop.f32.mrb[0].mxu1 }
 0x2cc   : > { %v1592_v35 = vadd.f32 %v3931_v34, %v5263_v33  ;;  %v1456_v36 = vpop.f32.mrb[1].mxu1 }
 0x2cd   : > { %v1590_v37 = vadd.f32 %v5263_v33, %v1456_v36  ;;  %v3932_v38 = vpop.f32.mrb[2].mxu1 }
 0x2ce   : > { %v1593_v39 = vadd.f32 %v3932_v38, %v5263_v33  ;;  %v1459_v40 = vpop.f32.mrb[3].mxu1  ;;  %v1624_v42 = vmax.f32 %v1592_v35, 0.0 }
 0x2cf   : > { %v1591_v41 = vadd.f32 %v5263_v33, %v1459_v40  ;;  %v1622_v44 = vmax.f32 %v1590_v37, 0.0 }
 0x2d0   : > { %v1625_v43 = vmax.f32 %v1593_v39, 0.0 }
 0x2d1   : > { %v1623_v45 = vmax.f32 %v1591_v41, 0.0 }
 0x2d2   : > { %v1655_v46 = vpack.c.bf16 %v1625_v43, %v1624_v42 }
 0x2d3   : > { %v1654_v47 = vpack.c.bf16 %v1623_v45, %v1622_v44 }
 0x2d4   : > { %1675 = vst [vmem:[#allocation2 + $0x8] sm:$0xff] %v1655_v46 }
 0x2d5   : > { %1674 = vst [vmem:[#allocation2] sm:$0xff] %v1654_v47 }
 0x2db   : > { %v3935_v48 = vpop.f32.mrb[4].mxu1 }
 0x2dc   : > { %v1596_v49 = vadd.f32 %v3935_v48, %v5263_v33  ;;  %v1472_v50 = vpop.f32.mrb[5].mxu1 }
 0x2dd   : > { %v1594_v51 = vadd.f32 %v5263_v33, %v1472_v50  ;;  %v3936_v52 = vpop.f32.mrb[6].mxu1 }
 0x2de   : > { %v1597_v53 = vadd.f32 %v3936_v52, %v5263_v33  ;;  %v1475_v54 = vpop.f32.mrb[7].mxu1  ;;  %v1628_v56 = vmax.f32 %v1596_v49, 0.0 }
 0x2df   : > { %v1595_v55 = vadd.f32 %v5263_v33, %v1475_v54  ;;  %v1626_v58 = vmax.f32 %v1594_v51, 0.0 }
 0x2e0   : > { %v1629_v57 = vmax.f32 %v1597_v53, 0.0 }
 0x2e1   : > { %v1627_v59 = vmax.f32 %v1595_v55, 0.0 }
 0x2e2   : > { %v1657_v60 = vpack.c.bf16 %v1629_v57, %v1628_v56 }
 0x2e3   : > { %v1656_v61 = vpack.c.bf16 %v1627_v59, %v1626_v58 }
 0x2e4   : > { %1677 = vst [vmem:[#allocation2 + $0x18] sm:$0xff] %v1657_v60 }
 0x2e5   : > { %1676 = vst [vmem:[#allocation2 + $0x10] sm:$0xff] %v1656_v61 }
 0x2eb   : > { %v3939_v62 = vpop.f32.mrb[8].mxu1 }
 0x2ec   : > { %v1600_v63 = vadd.f32 %v3939_v62, %v5263_v33  ;;  %v1488_v32 = vpop.f32.mrb[9].mxu1 }
 0x2ed   : > { %v1598_v34 = vadd.f32 %v5263_v33, %v1488_v32  ;;  %v3940_v35 = vpop.f32.mrb[10].mxu1 }
 0x2ee   : > { %v1601_v36 = vadd.f32 %v3940_v35, %v5263_v33  ;;  %v1491_v37 = vpop.f32.mrb[11].mxu1  ;;  %v1632_v39 = vmax.f32 %v1600_v63, 0.0 }
 0x2ef   : > { %v1599_v38 = vadd.f32 %v5263_v33, %v1491_v37  ;;  %v1630_v41 = vmax.f32 %v1598_v34, 0.0 }
 0x2f0   : > { %v1633_v40 = vmax.f32 %v1601_v36, 0.0 }
 0x2f1   : > { %v1631_v42 = vmax.f32 %v1599_v38, 0.0 }
 0x2f2   : > { %v1659_v43 = vpack.c.bf16 %v1633_v40, %v1632_v39 }
 0x2f3   : > { %v1658_v44 = vpack.c.bf16 %v1631_v42, %v1630_v41 }
 0x2f4   : > { %1679 = vst [vmem:[#allocation2 + $0x28] sm:$0xff] %v1659_v43 }
 0x2f5   : > { %1678 = vst [vmem:[#allocation2 + $0x20] sm:$0xff] %v1658_v44 }
 0x2fb   : > { %v3943_v45 = vpop.f32.mrb[12].mxu1 }
 0x2fc   : > { %v1604_v46 = vadd.f32 %v3943_v45, %v5263_v33  ;;  %v1504_v47 = vpop.f32.mrb[13].mxu1 }
 0x2fd   : > { %v1602_v48 = vadd.f32 %v5263_v33, %v1504_v47  ;;  %v3944_v49 = vpop.f32.mrb[14].mxu1 }
 0x2fe   : > { %v1605_v50 = vadd.f32 %v3944_v49, %v5263_v33  ;;  %v1507_v51 = vpop.f32.mrb[15].mxu1  ;;  %v1636_v53 = vmax.f32 %v1604_v46, 0.0 }
 0x2ff   : > { %v1603_v52 = vadd.f32 %v5263_v33, %v1507_v51  ;;  %v1634_v55 = vmax.f32 %v1602_v48, 0.0 }
 0x300   : > { %v1637_v54 = vmax.f32 %v1605_v50, 0.0 }
 0x301   : > { %v1635_v56 = vmax.f32 %v1603_v52, 0.0 }
 0x302   : > { %v1661_v57 = vpack.c.bf16 %v1637_v54, %v1636_v53 }
 0x303   : > { %v1660_v58 = vpack.c.bf16 %v1635_v56, %v1634_v55 }
 0x304   : > { %1681 = vst [vmem:[#allocation2 + $0x38] sm:$0xff] %v1661_v57 }
 0x305   : > { %1680 = vst [vmem:[#allocation2 + $0x30] sm:$0xff] %v1660_v58 }
 0x30b   : > { %v3947_v59 = vpop.f32.mrb[16].mxu1 }
 0x30c   : > { %v1608_v60 = vadd.f32 %v3947_v59, %v5263_v33  ;;  %v1520_v61 = vpop.f32.mrb[17].mxu1 }
 0x30d   : > { %v1606_v62 = vadd.f32 %v5263_v33, %v1520_v61  ;;  %v3948_v63 = vpop.f32.mrb[18].mxu1 }
 0x30e   : > { %v1609_v32 = vadd.f32 %v3948_v63, %v5263_v33  ;;  %v1523_v34 = vpop.f32.mrb[19].mxu1  ;;  %v1640_v36 = vmax.f32 %v1608_v60, 0.0 }
 0x30f   : > { %v1607_v35 = vadd.f32 %v5263_v33, %v1523_v34  ;;  %v1638_v38 = vmax.f32 %v1606_v62, 0.0 }
 0x310   : > { %v1641_v37 = vmax.f32 %v1609_v32, 0.0 }
 0x311   : > { %v1639_v39 = vmax.f32 %v1607_v35, 0.0 }
 0x312   : > { %v1663_v40 = vpack.c.bf16 %v1641_v37, %v1640_v36 }
 0x313   : > { %v1662_v41 = vpack.c.bf16 %v1639_v39, %v1638_v38 }
 0x314   : > { %1683 = vst [vmem:[#allocation2 + $0x48] sm:$0xff] %v1663_v40 }
 0x315   : > { %1682 = vst [vmem:[#allocation2 + $0x40] sm:$0xff] %v1662_v41 }
 0x31b   : > { %v3951_v42 = vpop.f32.mrb[20].mxu1 }
 0x31c   : > { %v1612_v43 = vadd.f32 %v3951_v42, %v5263_v33  ;;  %v1536_v44 = vpop.f32.mrb[21].mxu1 }
 0x31d   : > { %v1610_v45 = vadd.f32 %v5263_v33, %v1536_v44  ;;  %v3952_v46 = vpop.f32.mrb[22].mxu1 }
 0x31e   : > { %v1613_v47 = vadd.f32 %v3952_v46, %v5263_v33  ;;  %v1539_v48 = vpop.f32.mrb[23].mxu1  ;;  %v1644_v50 = vmax.f32 %v1612_v43, 0.0 }
 0x31f   : > { %v1611_v49 = vadd.f32 %v5263_v33, %v1539_v48  ;;  %v1642_v52 = vmax.f32 %v1610_v45, 0.0 }
 0x320   : > { %v1645_v51 = vmax.f32 %v1613_v47, 0.0 }
 0x321   : > { %v1643_v53 = vmax.f32 %v1611_v49, 0.0 }
 0x322   : > { %v1665_v54 = vpack.c.bf16 %v1645_v51, %v1644_v50 }
 0x323   : > { %v1664_v55 = vpack.c.bf16 %v1643_v53, %v1642_v52 }
 0x324   : > { %1685 = vst [vmem:[#allocation2 + $0x58] sm:$0xff] %v1665_v54 }
 0x325   : > { %1684 = vst [vmem:[#allocation2 + $0x50] sm:$0xff] %v1664_v55 }
 0x32b   : > { %v3955_v56 = vpop.f32.mrb[24].mxu1 }
 0x32c   : > { %v1616_v57 = vadd.f32 %v3955_v56, %v5263_v33  ;;  %v1552_v58 = vpop.f32.mrb[25].mxu1 }
 0x32d   : > { %v1614_v59 = vadd.f32 %v5263_v33, %v1552_v58  ;;  %v3956_v60 = vpop.f32.mrb[26].mxu1 }
 0x32e   : > { %v1617_v61 = vadd.f32 %v3956_v60, %v5263_v33  ;;  %v1555_v62 = vpop.f32.mrb[27].mxu1  ;;  %v1648_v32 = vmax.f32 %v1616_v57, 0.0 }
 0x32f   : > { %v1615_v63 = vadd.f32 %v5263_v33, %v1555_v62  ;;  %v1646_v35 = vmax.f32 %v1614_v59, 0.0 }
 0x330   : > { %v1649_v34 = vmax.f32 %v1617_v61, 0.0 }
 0x331   : > { %v1647_v36 = vmax.f32 %v1615_v63, 0.0 }
 0x332   : > { %v1667_v37 = vpack.c.bf16 %v1649_v34, %v1648_v32 }
 0x333   : > { %v1666_v38 = vpack.c.bf16 %v1647_v36, %v1646_v35 }
 0x334   : > { %1687 = vst [vmem:[#allocation2 + $0x68] sm:$0xff] %v1667_v37 }
 0x335   : > { %1686 = vst [vmem:[#allocation2 + $0x60] sm:$0xff] %v1666_v38 }
 0x33b   : > { %v3959_v39 = vpop.f32.mrb[28].mxu1 }
 0x33c   : > { %v1620_v40 = vadd.f32 %v3959_v39, %v5263_v33  ;;  %v1568_v41 = vpop.f32.mrb[29].mxu1 }
 0x33d   : > { %v1618_v42 = vadd.f32 %v5263_v33, %v1568_v41  ;;  %v3960_v43 = vpop.f32.mrb[30].mxu1 }
 0x33e   : > { %v1621_v44 = vadd.f32 %v3960_v43, %v5263_v33  ;;  %v1571_v45 = vpop.f32.mrb[31].mxu1  ;;  %v1652_v47 = vmax.f32 %v1620_v40, 0.0 }
 0x33f   : > { %v1619_v46 = vadd.f32 %v5263_v33, %v1571_v45  ;;  %v1650_v49 = vmax.f32 %v1618_v42, 0.0 }
 0x340   : > { %v1653_v48 = vmax.f32 %v1621_v44, 0.0 }
 0x341   : > { %v1651_v50 = vmax.f32 %v1619_v46, 0.0 }
 0x342   : > { %v1669_v51 = vpack.c.bf16 %v1653_v48, %v1652_v47 }
 0x343   : > { %v1668_v52 = vpack.c.bf16 %v1651_v50, %v1650_v49 }
 0x344   : > { %1689 = vst [vmem:[#allocation2 + $0x78] sm:$0xff] %v1669_v51 }
 0x345   : > { %1688 = vst [vmem:[#allocation2 + $0x70] sm:$0xff] %v1668_v52 }
 0x346 PF: > { %p3458_p3 = scmp.ne.s32.totalorder %s4792_s17, 1 }
 0x347   : > { %v5298_v53 = vld [vmem:[#allocation2 + $0x40] sm:$0xff] (!%p3458_p3)  ;;  %v5302_v55 = vld [vmem:[#allocation2 + $0x48] sm:$0xff] (!%p3458_p3)  ;;  %v3460_v33 = vcombine.high (!%p3458_p3), %v5131_v0, %v5133_v1  ;;  %v5312_v57 = vld [vmem:[#allocation2 + $0x50] sm:$0xff] (!%p3458_p3)  ;;  %v3484_v58 = vcombine.high (!%p3458_p3), %v5179_v24, %v5181_v25  ;;  %v3459_v39 = vcombine.low (!%p3458_p3), %v5131_v0, %v5133_v1  ;;  %v3462_v41 = vcombine.high (!%p3458_p3), %v5135_v2, %v5137_v3 }
 0x348   : > { %1725 = sbr.rel (%p3458_p3) target bundleno = 1953 (0x7a1), region = 104  ;;  %v5300_v54 = vld [vmem:[#allocation2] sm:$0xff] (!%p3458_p3)  ;;  %3681 = vmatprep.subr.bf16.mxu0 (!%p3458_p3), %v5298_v53  ;;  %v5309_v56 = vld [vmem:[#allocation2 + $0x8] sm:$0xff] (!%p3458_p3)  ;;  %4137 = vmatprep.subr.bf16.mxu1 (!%p3458_p3), %v5298_v53  ;;  %v5320_v59 = vld [vmem:[#allocation2 + $0x10] sm:$0xff] (!%p3458_p3)  ;;  %v3483_v42 = vcombine.low (!%p3458_p3), %v5179_v24, %v5181_v25  ;;  %v3486_v43 = vcombine.high (!%p3458_p3), %v5183_v26, %v5185_v27  ;;  %v3461_v0 = vcombine.low (!%p3458_p3), %v5135_v2, %v5137_v3 }
 0x349   : > { %3682 = vmatpush3.bf16.msra.mxu0 (!%p3458_p3), %v5300_v54  ;;  %1954 = vmatprep.mubr.bf16.mxu0 (!%p3458_p3), %v3460_v33  ;;  %v5322_v60 = vld [vmem:[#allocation2 + $0x58] sm:$0xff] (!%p3458_p3)  ;;  %v5330_v62 = vld [vmem:[#allocation2 + $0x60] sm:$0xff] (!%p3458_p3)  ;;  %v5338_v32 = vld [vmem:[#allocation2 + $0x68] sm:$0xff] (!%p3458_p3)  ;;  %v3464_v24 = vcombine.high (!%p3458_p3), %v5139_v4, %v5141_v5  ;;  %v3485_v25 = vcombine.low (!%p3458_p3), %v5183_v26, %v5185_v27  ;;  %v3488_v45 = vcombine.high (!%p3458_p3), %v5187_v28, %v5189_v29 }
 0x34a   : > { %3683 = vmatprep.subr.bf16.mxu0 (!%p3458_p3), %v5302_v55  ;;  %4145 = vmatpush3.bf16.msra.mxu1 (!%p3458_p3), %v5300_v54  ;;  %v5328_v61 = vld [vmem:[#allocation2 + $0x18] sm:$0xff] (!%p3458_p3)  ;;  %v5336_v63 = vld [vmem:[#allocation2 + $0x20] sm:$0xff] (!%p3458_p3)  ;;  %v5341_v34 = vld [vmem:[#allocation2 + $0x28] sm:$0xff] (!%p3458_p3)  ;;  %v3463_v2 = vcombine.low (!%p3458_p3), %v5139_v4, %v5141_v5  ;;  %v3466_v47 = vcombine.high (!%p3458_p3), %v5143_v6, %v5145_v7  ;;  %v3487_v26 = vcombine.low (!%p3458_p3), %v5187_v28, %v5189_v29 }
 0x34b   : > { %4138 = vmatprep.subr.bf16.mxu1 (!%p3458_p3), %v5302_v55  ;;  %2050 = vmatprep.mubr.bf16.mxu1 (!%p3458_p3), %v3484_v58  ;;  %v5349_v36 = vld [vmem:[#allocation2 + $0x30] sm:$0xff] (!%p3458_p3)  ;;  %v5353_v37 = vld [vmem:[#allocation2 + $0x78] sm:$0xff] (!%p3458_p3)  ;;  %v4352_v40 = vld [vmem:[#allocation14] sm:$0xff] (!%p3458_p3)   ;;  %v3490_v27 = vcombine.high (!%p3458_p3), %v5191_v30, %v5193_v31  ;;  %v3465_v4 = vcombine.low (!%p3458_p3), %v5143_v6, %v5145_v7  ;;  %v3468_v49 = vcombine.high (!%p3458_p3), %v5147_v8, %v5149_v9 }
 0x34c   : > { %v5345_v35 = vld [vmem:[#allocation2 + $0x70] sm:$0xff] (!%p3458_p3)  ;;  %v5360_v38 = vld [vmem:[#allocation2 + $0x38] sm:$0xff] (!%p3458_p3)  ;;  %v4353_v44 = vld [vmem:[#allocation14 + $0x8] sm:$0xff] (!%p3458_p3)   ;;  %v3489_v28 = vcombine.low (!%p3458_p3), %v5191_v30, %v5193_v31  ;;  %v3467_v6 = vcombine.low (!%p3458_p3), %v5147_v8, %v5149_v9  ;;  %v3470_v50 = vcombine.high (!%p3458_p3), %v5151_v10, %v5153_v11  ;;  %v3469_v31 = vcombine.low (!%p3458_p3), %v5151_v10, %v5153_v11 }
 0x34d   : > { %3684 = vmatpush3.bf16.msra.mxu0 (!%p3458_p3), %v5309_v56  ;;  %v4354_v1 = vld [vmem:[#allocation14 + $0x10] sm:$0xff] (!%p3458_p3)   ;;  %v4355_v46 = vld [vmem:[#allocation14 + $0x18] sm:$0xff] (!%p3458_p3)   ;;  %v4356_v3 = vld [vmem:[#allocation14 + $0x20] sm:$0xff] (!%p3458_p3)   ;;  %v3472_v9 = vcombine.high (!%p3458_p3), %v5155_v12, %v5157_v13  ;;  %v3471_v52 = vcombine.low (!%p3458_p3), %v5155_v12, %v5157_v13  ;;  %v3474_v10 = vcombine.high (!%p3458_p3), %v5159_v14, %v5161_v15  ;;  %v3473_v11 = vcombine.low (!%p3458_p3), %v5159_v14, %v5161_v15 }
 0x34e   : > { %3685 = vmatprep.subr.bf16.mxu0 (!%p3458_p3), %v5312_v57  ;;  %4146 = vmatpush3.bf16.msra.mxu1 (!%p3458_p3), %v5309_v56  ;;  %v4357_v48 = vld [vmem:[#allocation14 + $0x28] sm:$0xff] (!%p3458_p3)   ;;  %v4358_v5 = vld [vmem:[#allocation14 + $0x30] sm:$0xff] (!%p3458_p3)   ;;  %v4359_v29 = vld [vmem:[#allocation14 + $0x38] sm:$0xff] (!%p3458_p3)   ;;  %v3475_v12 = vcombine.low (!%p3458_p3), %v5163_v16, %v5165_v17  ;;  %v3478_v13 = vcombine.high (!%p3458_p3), %v5167_v18, %v5169_v19  ;;  %v3477_v14 = vcombine.low (!%p3458_p3), %v5167_v18, %v5169_v19 }
 0x34f   : > { %4139 = vmatprep.subr.bf16.mxu1 %v5312_v57  ;;  %v4360_v7 = vld [vmem:[#allocation12] sm:$0xff]   ;;  %v4361_v30 = vld [vmem:[#allocation12 + $0x8] sm:$0xff]   ;;  %v4362_v8 = vld [vmem:[#allocation12 + $0x10] sm:$0xff]   ;;  %v3480_v15 = vcombine.high %v5171_v20, %v5173_v21  ;;  %v3481_v18 = vcombine.low %v5175_v22, %v5177_v23 }
 0x350   : > { %v4363_v51 = vld [vmem:[#allocation12 + $0x18] sm:$0xff]   ;;  %v4365_v19 = vld [vmem:[#allocation12 + $0x28] sm:$0xff]  }
 0x351   : > { %3686 = vmatpush3.bf16.msra.mxu0 %v5320_v59  ;;  %v4369_v33 = vld [vmem:[#allocation15 + $0x8] sm:$0xff]  }
 0x352   : > { %3687 = vmatprep.subr.bf16.mxu0 %v5322_v60  ;;  %4147 = vmatpush3.bf16.msra.mxu1 %v5320_v59  ;;  %v4373_v58 = vld [vmem:[#allocation15 + $0x28] sm:$0xff]  }
 0x353   : > { %4140 = vmatprep.subr.bf16.mxu1 %v5322_v60 }
 0x355   : > { %3688 = vmatpush3.bf16.msra.mxu0 %v5328_v61 }
 0x356   : > { %3689 = vmatprep.subr.bf16.mxu0 %v5330_v62  ;;  %4148 = vmatpush3.bf16.msra.mxu1 %v5328_v61 }
 0x357   : > { %4141 = vmatprep.subr.bf16.mxu1 %v5330_v62 }
 0x359   : > { %3690 = vmatpush3.bf16.msra.mxu0 %v5336_v63 }
 0x35a   : > { %3691 = vmatprep.subr.bf16.mxu0 %v5338_v32  ;;  %4149 = vmatpush3.bf16.msra.mxu1 %v5336_v63 }
 0x35b   : > { %4142 = vmatprep.subr.bf16.mxu1 %v5338_v32 }
 0x35d   : > { %3692 = vmatpush3.bf16.msra.mxu0 %v5341_v34 }
 0x35e   : > { %3693 = vmatprep.subr.bf16.mxu0 %v5345_v35  ;;  %4150 = vmatpush3.bf16.msra.mxu1 %v5341_v34 }
 0x35f   : > { %4143 = vmatprep.subr.bf16.mxu1 %v5345_v35 }
 0x361   : > { %3694 = vmatpush3.bf16.msra.mxu0 %v5349_v36 }
 0x362   : > { %3695 = vmatprep.subr.bf16.mxu0 %v5353_v37  ;;  %4151 = vmatpush3.bf16.msra.mxu1 %v5349_v36 }
 0x363   : > { %4144 = vmatprep.subr.bf16.mxu1 %v5353_v37 }
 0x365   : > { %3696 = vmatpush3.bf16.msra.mxu0 %v5360_v38 }
 0x366   : > { %4152 = vmatpush3.bf16.msra.mxu1 %v5360_v38 }
 0x367   : > { %3961 = vmatprep.subr.bf16.mxu1 %v4352_v40 }
 0x368   : > { %1955 = vmatmul.mubr.bf16.vlgmr.msra.gmra.mrb[0].mxu0 %v3459_v39 }
 0x369   : > { %1962 = vmatprep.mubr.bf16.mxu0 %v3462_v41  ;;  %2051 = vmatmul.mubr.bf16.vlgmr.msra.gmra.mrb[0].mxu1 %v3483_v42 }
 0x36a   : > { %2058 = vmatprep.mubr.bf16.mxu1 %v3486_v43  ;;  %3962 = vmatpush3.bf16.msra.mxu1 %v4352_v40 }
 0x36b   : > { %3963 = vmatprep.subr.bf16.mxu1 %v4353_v44 }
 0x36e   : > { %3964 = vmatpush3.bf16.msra.mxu1 %v4353_v44 }
 0x36f   : > { %3965 = vmatprep.subr.bf16.mxu1 %v4354_v1 }
 0x370   : > { %1963 = vmatmul.mubr.bf16.gmra.mrb[4].mxu0 %v3461_v0 }
 0x371   : > { %1970 = vmatprep.mubr.bf16.mxu0 %v3464_v24  ;;  %2059 = vmatmul.mubr.bf16.gmra.mrb[4].mxu1 %v3485_v25 }
 0x372   : > { %2066 = vmatprep.mubr.bf16.mxu1 %v3488_v45  ;;  %3966 = vmatpush3.bf16.msra.mxu1 %v4354_v1 }
 0x373   : > { %3967 = vmatprep.subr.bf16.mxu1 %v4355_v46 }
 0x376   : > { %3968 = vmatpush3.bf16.msra.mxu1 %v4355_v46 }
 0x377   : > { %3969 = vmatprep.subr.bf16.mxu1 %v4356_v3 }
 0x378   : > { %1971 = vmatmul.mubr.bf16.gmra.mrb[8].mxu0 %v3463_v2 }
 0x379   : > { %1978 = vmatprep.mubr.bf16.mxu0 %v3466_v47  ;;  %2067 = vmatmul.mubr.bf16.gmra.mrb[8].mxu1 %v3487_v26 }
 0x37a   : > { %2074 = vmatprep.mubr.bf16.mxu1 %v3490_v27  ;;  %3970 = vmatpush3.bf16.msra.mxu1 %v4356_v3 }
 0x37b   : > { %3971 = vmatprep.subr.bf16.mxu1 %v4357_v48 }
 0x37e   : > { %3972 = vmatpush3.bf16.msra.mxu1 %v4357_v48 }
 0x37f   : > { %3973 = vmatprep.subr.bf16.mxu1 %v4358_v5 }
 0x380   : > { %1979 = vmatmul.mubr.bf16.gmra.mrb[12].mxu0 %v3465_v4 }
 0x381   : > { %1986 = vmatprep.mubr.bf16.mxu0 %v3468_v49  ;;  %2075 = vmatmul.mubr.bf16.gmra.mrb[12].mxu1 %v3489_v28 }
 0x382   : > { %3974 = vmatpush3.bf16.msra.mxu1 %v4358_v5  ;;  %3977 = vmatprep.mubr.bf16.mxu1 %v5300_v54  ;;  %v3476_v54 = vcombine.high %v5163_v16, %v5165_v17  ;;  %v3479_v16 = vcombine.low %v5171_v20, %v5173_v21  ;;  %v3482_v17 = vcombine.high %v5175_v22, %v5177_v23  ;;  %v4366_v20 = vld [vmem:[#allocation12 + $0x30] sm:$0xff]   ;;  %v4367_v21 = vld [vmem:[#allocation12 + $0x38] sm:$0xff]   ;;  %v4372_v23 = vld [vmem:[#allocation15 + $0x20] sm:$0xff]  }
 0x383   : > { %3975 = vmatprep.subr.bf16.mxu1 %v4359_v29  ;;  %v4371_v22 = vld [vmem:[#allocation15 + $0x18] sm:$0xff]  }
 0x386   : > { %3976 = vmatpush3.bf16.msra.mxu1 %v4359_v29 }
 0x387   : > { %4009 = vmatprep.subr.bf16.mxu1 %v4360_v7 }
 0x388   : > { %1987 = vmatmul.mubr.bf16.gmra.mrb[16].mxu0 %v3467_v6 }
 0x389   : > { %1994 = vmatprep.mubr.bf16.mxu0 %v3470_v50  ;;  %3978 = vmatmul.mubr.bf16.vlgmr.msra.gmra.mrb[16].mxu1 %v5309_v56  ;;  %v4370_v56 = vld [vmem:[#allocation15 + $0x10] sm:$0xff]  }
 0x38a   : > { %3981 = vmatprep.mubr.bf16.mxu1 %v5320_v59  ;;  %4010 = vmatpush3.bf16.msra.mxu1 %v4360_v7 }
 0x38b   : > { %4011 = vmatprep.subr.bf16.mxu1 %v4361_v30 }
 0x38e   : > { %4012 = vmatpush3.bf16.msra.mxu1 %v4361_v30 }
 0x38f   : > { %4013 = vmatprep.subr.bf16.mxu1 %v4362_v8 }
 0x390   : > { %1995 = vmatmul.mubr.bf16.gmra.mrb[20].mxu0 %v3469_v31 }
 0x391   : > { %2002 = vmatprep.mubr.bf16.mxu0 %v3472_v9  ;;  %3982 = vmatmul.mubr.bf16.gmra.mrb[20].mxu1 %v5328_v61 }
 0x392   : > { %3985 = vmatprep.mubr.bf16.mxu1 %v5336_v63  ;;  %4014 = vmatpush3.bf16.msra.mxu1 %v4362_v8 }
 0x393   : > { %4015 = vmatprep.subr.bf16.mxu1 %v4363_v51 }
 0x396   : > { %4016 = vmatpush3.bf16.msra.mxu1 %v4363_v51 }
 0x398   : > { %2003 = vmatmul.mubr.bf16.gmra.mrb[24].mxu0 %v3471_v52 }
 0x399   : > { %2010 = vmatprep.mubr.bf16.mxu0 %v3474_v10  ;;  %3986 = vmatmul.mubr.bf16.gmra.mrb[24].mxu1 %v5341_v34 }
 0x39a   : > { %3989 = vmatprep.mubr.bf16.mxu1 %v5349_v36 }
 0x3a0   : > { %2011 = vmatmul.mubr.bf16.gmra.mrb[28].mxu0 %v3473_v11 }
 0x3a1   : > { %2018 = vmatprep.mubr.bf16.mxu0 %v3476_v54  ;;  %3990 = vmatmul.mubr.bf16.gmra.mrb[28].mxu1 %v5360_v38 }
 0x3a2   : > { %3993 = vmatprep.mubr.bf16.mxu1 %v5298_v53  ;;  %v4364_v53 = vld [vmem:[#allocation12 + $0x20] sm:$0xff]  }
 0x3a3   : > { %4017 = vmatprep.subr.bf16.mxu1 %v4364_v53 }
 0x3a4   : > { %4018 = vmatpush3.bf16.msra.mxu1 %v4364_v53 }
 0x3a5   : > { %4019 = vmatprep.subr.bf16.mxu1 %v4365_v19 }
 0x3a8   : > { %2019 = vmatmul.mubr.bf16.gmra.mrb[32].mxu0 %v3475_v12  ;;  %4020 = vmatpush3.bf16.msra.mxu1 %v4365_v19 }
 0x3a9   : > { %2026 = vmatprep.mubr.bf16.mxu0 %v3478_v13  ;;  %3994 = vmatmul.mubr.bf16.gmra.mrb[32].mxu1 %v5302_v55  ;;  %v4368_v55 = vld [vmem:[#allocation15] sm:$0xff]  }
 0x3aa   : > { %3997 = vmatprep.mubr.bf16.mxu1 %v5312_v57  ;;  %4021 = vmatprep.subr.bf16.mxu1 %v4366_v20 }
 0x3ab   : > { %4057 = vmatprep.subr.bf16.mxu0 %v4368_v55 }
 0x3ac   : > { %4022 = vmatpush3.bf16.msra.mxu1 %v4366_v20  ;;  %4058 = vmatpush3.bf16.msra.mxu0 %v4368_v55 }
 0x3ad   : > { %4023 = vmatprep.subr.bf16.mxu1 %v4367_v21  ;;  %4059 = vmatprep.subr.bf16.mxu0 %v4369_v33 }
 0x3b0   : > { %2027 = vmatmul.mubr.bf16.gmra.mrb[36].mxu0 %v3477_v14  ;;  %4024 = vmatpush3.bf16.msra.mxu1 %v4367_v21 }
 0x3b1   : > { %2034 = vmatprep.mubr.bf16.mxu0 %v3480_v15  ;;  %3998 = vmatmul.mubr.bf16.gmra.mrb[36].mxu1 %v5322_v60 }
 0x3b2   : > { %4001 = vmatprep.mubr.bf16.mxu1 %v5330_v62  ;;  %4060 = vmatpush3.bf16.msra.mxu0 %v4369_v33 }
 0x3b3   : > { %4061 = vmatprep.subr.bf16.mxu0 %v4370_v56 }
 0x3b6   : > { %4062 = vmatpush3.bf16.msra.mxu0 %v4370_v56 }
 0x3b7   : > { %4063 = vmatprep.subr.bf16.mxu0 %v4371_v22 }
 0x3b8   : > { %2035 = vmatmul.mubr.bf16.gmra.mrb[40].mxu0 %v3479_v16 }
 0x3b9   : > { %2042 = vmatprep.mubr.bf16.mxu0 %v3482_v17  ;;  %4002 = vmatmul.mubr.bf16.gmra.mrb[40].mxu1 %v5338_v32 }
 0x3ba   : > { %4005 = vmatprep.mubr.bf16.mxu1 %v5345_v35  ;;  %4064 = vmatpush3.bf16.msra.mxu0 %v4371_v22 }
 0x3bb   : > { %4065 = vmatprep.subr.bf16.mxu0 %v4372_v23 }
 0x3be   : > { %4066 = vmatpush3.bf16.msra.mxu0 %v4372_v23 }
 0x3bf   : > { %4067 = vmatprep.subr.bf16.mxu0 %v4373_v58 }
 0x3c0   : > { %2043 = vmatmul.mubr.bf16.gmra.mrb[44].mxu0 %v3481_v18 }
 0x3c1   : > { %4006 = vmatmul.mubr.bf16.gmra.mrb[44].mxu1 %v5353_v37 }
 0x3c2   : > { %4068 = vmatpush3.bf16.msra.mxu0 %v4373_v58 }
 0x43b   : > { %v3697_v57 = vpop.f32.mrb[0].mxu0 }
 0x43c   : > { %v3698_v59 = vpop.f32.mrb[1].mxu0  ;;  %v3769_v62 = vpop.f32.mrb[0].mxu1 }
 0x43d   : > { %v3699_v60 = vadd.f32 %v3698_v59, %v3697_v57  ;;  %v3700_v61 = vpop.f32.mrb[2].mxu0  ;;  %v3770_v32 = vpop.f32.mrb[1].mxu1 }
 0x43e   : > { %v3701_v63 = vpop.f32.mrb[3].mxu0  ;;  %v5442_v35 = vadd.f32 %v3770_v32, %v3769_v62  ;;  %v3772_v36 = vpop.f32.mrb[2].mxu1 }
 0x43f   : > { %v3702_v34 = vadd.f32 %v3701_v63, %v3700_v61  ;;  %v3773_v37 = vpop.f32.mrb[3].mxu1 }
 0x440   : > { %v5444_v39 = vadd.f32 %v3773_v37, %v3772_v36 }
 0x441   : > { %v2083_v38 = vpack.c.bf16 %v3702_v34, %v3699_v60 }
 0x442   : > { %v2095_v41 = vpack.c.bf16 %v5444_v39, %v5442_v35  ;;  %v5481_v35 = vld [vmem:[%s5853_s8] ss:$0 sm:$0xff] }
 0x443   : > { %v3703_v40 = vpop.f32.mrb[4].mxu0  ;;  %4025 = vmatprep.mubr.bf16.mxu1 %v2083_v38 }
 0x444   : > { %v3704_v42 = vpop.f32.mrb[5].mxu0  ;;  %v3775_v0 = vpop.f32.mrb[4].mxu1 }
 0x445   : > { %v3705_v43 = vadd.f32 %v3704_v42, %v3703_v40  ;;  %v3706_v44 = vpop.f32.mrb[6].mxu0  ;;  %v3776_v24 = vpop.f32.mrb[5].mxu1 }
 0x446   : > { %v3707_v1 = vpop.f32.mrb[7].mxu0  ;;  %v5448_v45 = vadd.f32 %v3776_v24, %v3775_v0  ;;  %v3778_v46 = vpop.f32.mrb[6].mxu1 }
 0x447   : > { %v3708_v25 = vadd.f32 %v3707_v1, %v3706_v44  ;;  %v3779_v2 = vpop.f32.mrb[7].mxu1 }
 0x448   : > { %v5450_v47 = vadd.f32 %v3779_v2, %v3778_v46 }
 0x449   : > { %v2084_v3 = vpack.c.bf16 %v3708_v25, %v3705_v43 }
 0x44a   : > { %v2096_v27 = vpack.c.bf16 %v5450_v47, %v5448_v45 }
 0x44b   : > { %v3709_v26 = vpop.f32.mrb[8].mxu0  ;;  %4026 = vmatmul.mubr.bf16.vlgmr.msra.gmra.mrb[16].mxu1 %v2084_v3 }
 0x44c   : > { %v3710_v48 = vpop.f32.mrb[9].mxu0  ;;  %v3781_v49 = vpop.f32.mrb[8].mxu1 }
 0x44d   : > { %v3711_v4 = vadd.f32 %v3710_v48, %v3709_v26  ;;  %v3712_v5 = vpop.f32.mrb[10].mxu0  ;;  %v3782_v29 = vpop.f32.mrb[9].mxu1 }
 0x44e   : > { %v3713_v28 = vpop.f32.mrb[11].mxu0  ;;  %v5454_v7 = vadd.f32 %v3782_v29, %v3781_v49  ;;  %v3784_v50 = vpop.f32.mrb[10].mxu1 }
 0x44f   : > { %v3714_v6 = vadd.f32 %v3713_v28, %v3712_v5  ;;  %v3785_v30 = vpop.f32.mrb[11].mxu1 }
 0x450   : > { %v5456_v8 = vadd.f32 %v3785_v30, %v3784_v50 }
 0x451   : > { %v2085_v31 = vpack.c.bf16 %v3714_v6, %v3711_v4 }
 0x452   : > { %v2097_v51 = vpack.c.bf16 %v5456_v8, %v5454_v7 }
 0x453   : > { %v3715_v9 = vpop.f32.mrb[12].mxu0  ;;  %4029 = vmatprep.mubr.bf16.mxu1 %v2085_v31 }
 0x454   : > { %v3716_v52 = vpop.f32.mrb[13].mxu0  ;;  %v3787_v54 = vpop.f32.mrb[12].mxu1 }
 0x455   : > { %v3717_v10 = vadd.f32 %v3716_v52, %v3715_v9  ;;  %v3718_v11 = vpop.f32.mrb[14].mxu0  ;;  %v3788_v13 = vpop.f32.mrb[13].mxu1 }
 0x456   : > { %v3719_v12 = vpop.f32.mrb[15].mxu0  ;;  %v5460_v15 = vadd.f32 %v3788_v13, %v3787_v54  ;;  %v3790_v16 = vpop.f32.mrb[14].mxu1 }
 0x457   : > { %v3720_v14 = vadd.f32 %v3719_v12, %v3718_v11  ;;  %v3791_v17 = vpop.f32.mrb[15].mxu1 }
 0x458   : > { %v5462_v18 = vadd.f32 %v3791_v17, %v3790_v16 }
 0x459   : > { %v2086_v53 = vpack.c.bf16 %v3720_v14, %v3717_v10 }
 0x45a   : > { %v2098_v20 = vpack.c.bf16 %v5462_v18, %v5460_v15 }
 0x45b   : > { %v3721_v19 = vpop.f32.mrb[16].mxu0  ;;  %4030 = vmatmul.mubr.bf16.gmra.mrb[20].mxu1 %v2086_v53 }
 0x45c   : > { %v3722_v21 = vpop.f32.mrb[17].mxu0 }
 0x45d   : > { %v3723_v55 = vadd.f32 %v3722_v21, %v3721_v19  ;;  %v3724_v33 = vpop.f32.mrb[18].mxu0 }
 0x45e   : > { %v3725_v56 = vpop.f32.mrb[19].mxu0 }
 0x45f   : > { %v3726_v22 = vadd.f32 %v3725_v56, %v3724_v33  ;;  %v4374_v56 = vld [vmem:[#allocation15 + $0x30] sm:$0xff]  }
 0x460   : > { %4069 = vmatprep.subr.bf16.mxu0 %v4374_v56 }
 0x461   : > { %v2087_v23 = vpack.c.bf16 %v3726_v22, %v3723_v55  ;;  %4070 = vmatpush3.bf16.msra.mxu0 %v4374_v56  ;;  %v4375_v22 = vld [vmem:[#allocation15 + $0x38] sm:$0xff]  }
 0x462   : > { %4071 = vmatprep.subr.bf16.mxu0 %v4375_v22 }
 0x463   : > { %v3727_v57 = vpop.f32.mrb[20].mxu0  ;;  %4033 = vmatprep.mubr.bf16.mxu1 %v2087_v23 }
 0x464   : > { %v3728_v58 = vpop.f32.mrb[21].mxu0 }
 0x465   : > { %v3729_v59 = vadd.f32 %v3728_v58, %v3727_v57  ;;  %v3730_v60 = vpop.f32.mrb[22].mxu0  ;;  %4072 = vmatpush3.bf16.msra.mxu0 %v4375_v22 }
 0x466   : > { %v3731_v61 = vpop.f32.mrb[23].mxu0 }
 0x467   : > { %v3732_v62 = vadd.f32 %v3731_v61, %v3730_v60 }
 0x469   : > { %v2088_v63 = vpack.c.bf16 %v3732_v62, %v3729_v59 }
 0x46b   : > { %v3733_v32 = vpop.f32.mrb[24].mxu0  ;;  %4034 = vmatmul.mubr.bf16.gmra.mrb[24].mxu1 %v2088_v63 }
 0x46c   : > { %v3734_v34 = vpop.f32.mrb[25].mxu0 }
 0x46d   : > { %v3735_v36 = vadd.f32 %v3734_v34, %v3733_v32  ;;  %v3736_v37 = vpop.f32.mrb[26].mxu0 }
 0x46e   : > { %v3737_v38 = vpop.f32.mrb[27].mxu0 }
 0x46f   : > { %v3738_v40 = vadd.f32 %v3737_v38, %v3736_v37 }
 0x471   : > { %v2089_v42 = vpack.c.bf16 %v3738_v40, %v3735_v36 }
 0x473   : > { %v3739_v43 = vpop.f32.mrb[28].mxu0  ;;  %4037 = vmatprep.mubr.bf16.mxu1 %v2089_v42 }
 0x474   : > { %v3740_v44 = vpop.f32.mrb[29].mxu0 }
 0x475   : > { %v3741_v0 = vadd.f32 %v3740_v44, %v3739_v43  ;;  %v3742_v1 = vpop.f32.mrb[30].mxu0 }
 0x476   : > { %v3743_v24 = vpop.f32.mrb[31].mxu0 }
 0x477   : > { %v3744_v25 = vadd.f32 %v3743_v24, %v3742_v1 }
 0x479   : > { %v2090_v46 = vpack.c.bf16 %v3744_v25, %v3741_v0 }
 0x47b   : > { %v3745_v2 = vpop.f32.mrb[32].mxu0  ;;  %4038 = vmatmul.mubr.bf16.gmra.mrb[28].mxu1 %v2090_v46 }
 0x47c   : > { %v3746_v3 = vpop.f32.mrb[33].mxu0 }
 0x47d   : > { %v3747_v26 = vadd.f32 %v3746_v3, %v3745_v2  ;;  %v3748_v48 = vpop.f32.mrb[34].mxu0 }
 0x47e   : > { %v3749_v4 = vpop.f32.mrb[35].mxu0 }
 0x47f   : > { %v3750_v5 = vadd.f32 %v3749_v4, %v3748_v48 }
 0x481   : > { %v2091_v49 = vpack.c.bf16 %v3750_v5, %v3747_v26 }
 0x483   : > { %v3751_v28 = vpop.f32.mrb[36].mxu0  ;;  %4041 = vmatprep.mubr.bf16.mxu1 %v2091_v49 }
 0x484   : > { %v3752_v29 = vpop.f32.mrb[37].mxu0 }
 0x485   : > { %v3753_v6 = vadd.f32 %v3752_v29, %v3751_v28  ;;  %v3754_v50 = vpop.f32.mrb[38].mxu0 }
 0x486   : > { %v3755_v30 = vpop.f32.mrb[39].mxu0 }
 0x487   : > { %v3756_v31 = vadd.f32 %v3755_v30, %v3754_v50 }
 0x489   : > { %v2092_v9 = vpack.c.bf16 %v3756_v31, %v3753_v6 }
 0x48b   : > { %v3757_v52 = vpop.f32.mrb[40].mxu0  ;;  %4042 = vmatmul.mubr.bf16.gmra.mrb[32].mxu1 %v2092_v9 }
 0x48c   : > { %v3758_v10 = vpop.f32.mrb[41].mxu0 }
 0x48d   : > { %v3759_v11 = vadd.f32 %v3758_v10, %v3757_v52  ;;  %v3760_v54 = vpop.f32.mrb[42].mxu0 }
 0x48e   : > { %v3761_v12 = vpop.f32.mrb[43].mxu0 }
 0x48f   : > { %v3762_v13 = vadd.f32 %v3761_v12, %v3760_v54 }
 0x491   : > { %v2093_v14 = vpack.c.bf16 %v3762_v13, %v3759_v11 }
 0x493   : > { %v3763_v16 = vpop.f32.mrb[44].mxu0  ;;  %4045 = vmatprep.mubr.bf16.mxu1 %v2093_v14 }
 0x494   : > { %v3764_v17 = vpop.f32.mrb[45].mxu0 }
 0x495   : > { %v3765_v53 = vadd.f32 %v3764_v17, %v3763_v16  ;;  %v3766_v19 = vpop.f32.mrb[46].mxu0 }
 0x496   : > { %v3767_v21 = vpop.f32.mrb[47].mxu0 }
 0x497   : > { %v3768_v55 = vadd.f32 %v3767_v21, %v3766_v19 }
 0x499   : > { %v2094_v33 = vpack.c.bf16 %v3768_v55, %v3765_v53 }
 0x49b   : > { %4046 = vmatmul.mubr.bf16.gmra.mrb[36].mxu1 %v2094_v33 }
 0x49c   : > { %4049 = vmatprep.mubr.bf16.mxu1 %v2095_v41 }
 0x4a3   : > { %4050 = vmatmul.mubr.bf16.gmra.mrb[40].mxu1 %v2096_v27 }
 0x4a4   : > { %4053 = vmatprep.mubr.bf16.mxu1 %v2097_v51 }
 0x4ab   : > { %4054 = vmatmul.mubr.bf16.gmra.mrb[44].mxu1 %v2098_v20 }
 0x51e   : > { %v4027_v39 = vpop.f32.mrb[16].mxu1 }
 0x51f   : > { %v2558_v41 = vadd.f32 %v4027_v39, %v5481_v35  ;;  %v2422_v45 = vpop.f32.mrb[17].mxu1 }
 0x520   : > { %v2556_v47 = vadd.f32 %v5481_v35, %v2422_v45  ;;  %v4028_v27 = vpop.f32.mrb[18].mxu1 }
 0x521   : > { %v2559_v7 = vadd.f32 %v4028_v27, %v5481_v35  ;;  %v2425_v8 = vpop.f32.mrb[19].mxu1  ;;  %v2590_v23 = vmax.f32 %v2558_v41, 0.0 }
 0x522   : > { %v2557_v51 = vadd.f32 %v5481_v35, %v2425_v8  ;;  %v2588_v18 = vmax.f32 %v2556_v47, 0.0 }
 0x523   : > { %v2591_v15 = vmax.f32 %v2559_v7, 0.0 }
 0x524   : > { %v2589_v20 = vmax.f32 %v2557_v51, 0.0 }
 0x525   : > { %v2621_v57 = vpack.c.bf16 %v2591_v15, %v2590_v23 }
 0x526   : > { %v2620_v58 = vpack.c.bf16 %v2589_v20, %v2588_v18 }
 0x528   : > { %4073 = vmatprep.mubr.bf16.mxu0 %v2620_v58 }
 0x529   : > { %4074 = vmatmul.mubr.bf16.vlgmr.msra.gmra.mrb[48].mxu0 %v2621_v57 }
 0x52e   : > { %v4031_v59 = vpop.f32.mrb[20].mxu1 }
 0x52f   : > { %v2562_v60 = vadd.f32 %v4031_v59, %v5481_v35  ;;  %v2438_v61 = vpop.f32.mrb[21].mxu1 }
 0x530   : > { %v2560_v62 = vadd.f32 %v5481_v35, %v2438_v61  ;;  %v4032_v63 = vpop.f32.mrb[22].mxu1 }
 0x531   : > { %v2563_v32 = vadd.f32 %v4032_v63, %v5481_v35  ;;  %v2441_v34 = vpop.f32.mrb[23].mxu1  ;;  %v2594_v37 = vmax.f32 %v2562_v60, 0.0 }
 0x532   : > { %v2561_v36 = vadd.f32 %v5481_v35, %v2441_v34  ;;  %v2592_v40 = vmax.f32 %v2560_v62, 0.0 }
 0x533   : > { %v2595_v38 = vmax.f32 %v2563_v32, 0.0 }
 0x534   : > { %v2593_v42 = vmax.f32 %v2561_v36, 0.0 }
 0x535   : > { %v2623_v43 = vpack.c.bf16 %v2595_v38, %v2594_v37 }
 0x536   : > { %v2622_v44 = vpack.c.bf16 %v2593_v42, %v2592_v40 }
 0x538   : > { %4077 = vmatprep.mubr.bf16.mxu0 %v2622_v44 }
 0x539   : > { %4078 = vmatmul.mubr.bf16.gmra.mrb[52].mxu0 %v2623_v43 }
 0x53e   : > { %v4035_v0 = vpop.f32.mrb[24].mxu1 }
 0x53f   : > { %v2566_v1 = vadd.f32 %v4035_v0, %v5481_v35  ;;  %v2454_v24 = vpop.f32.mrb[25].mxu1 }
 0x540   : > { %v2564_v25 = vadd.f32 %v5481_v35, %v2454_v24  ;;  %v4036_v46 = vpop.f32.mrb[26].mxu1 }
 0x541   : > { %v2567_v2 = vadd.f32 %v4036_v46, %v5481_v35  ;;  %v2457_v3 = vpop.f32.mrb[27].mxu1  ;;  %v2598_v48 = vmax.f32 %v2566_v1, 0.0 }
 0x542   : > { %v2565_v26 = vadd.f32 %v5481_v35, %v2457_v3  ;;  %v2596_v5 = vmax.f32 %v2564_v25, 0.0 }
 0x543   : > { %v2599_v4 = vmax.f32 %v2567_v2, 0.0 }
 0x544   : > { %v2597_v49 = vmax.f32 %v2565_v26, 0.0 }
 0x545   : > { %v2625_v28 = vpack.c.bf16 %v2599_v4, %v2598_v48 }
 0x546   : > { %v2624_v29 = vpack.c.bf16 %v2597_v49, %v2596_v5 }
 0x548   : > { %4081 = vmatprep.mubr.bf16.mxu0 %v2624_v29 }
 0x549   : > { %4082 = vmatmul.mubr.bf16.gmra.mrb[56].mxu0 %v2625_v28 }
 0x54e   : > { %v4039_v6 = vpop.f32.mrb[28].mxu1 }
 0x54f   : > { %v2570_v50 = vadd.f32 %v4039_v6, %v5481_v35  ;;  %v2470_v30 = vpop.f32.mrb[29].mxu1 }
 0x550   : > { %v2568_v31 = vadd.f32 %v5481_v35, %v2470_v30  ;;  %v4040_v9 = vpop.f32.mrb[30].mxu1 }
 0x551   : > { %v2571_v52 = vadd.f32 %v4040_v9, %v5481_v35  ;;  %v2473_v10 = vpop.f32.mrb[31].mxu1  ;;  %v2602_v54 = vmax.f32 %v2570_v50, 0.0 }
 0x552   : > { %v2569_v11 = vadd.f32 %v5481_v35, %v2473_v10  ;;  %v2600_v13 = vmax.f32 %v2568_v31, 0.0 }
 0x553   : > { %v2603_v12 = vmax.f32 %v2571_v52, 0.0 }
 0x554   : > { %v2601_v14 = vmax.f32 %v2569_v11, 0.0  ;;  %v5518_v11 = vld [vmem:[%s5855_s10] ss:$0 sm:$0xff] }
 0x555   : > { %v2627_v16 = vpack.c.bf16 %v2603_v12, %v2602_v54 }
 0x556   : > { %v2626_v17 = vpack.c.bf16 %v2601_v14, %v2600_v13 }
 0x558   : > { %4085 = vmatprep.mubr.bf16.mxu0 %v2626_v17 }
 0x559   : > { %4086 = vmatmul.mubr.bf16.gmra.mrb[60].mxu0 %v2627_v16 }
 0x55e   : > { %v4043_v53 = vpop.f32.mrb[32].mxu1 }
 0x55f   : > { %v2574_v19 = vadd.f32 %v4043_v53, %v5481_v35  ;;  %v2486_v21 = vpop.f32.mrb[33].mxu1 }
 0x560   : > { %v2572_v55 = vadd.f32 %v5481_v35, %v2486_v21  ;;  %v4044_v33 = vpop.f32.mrb[34].mxu1 }
 0x561   : > { %v2575_v56 = vadd.f32 %v4044_v33, %v5481_v35  ;;  %v2489_v22 = vpop.f32.mrb[35].mxu1  ;;  %v2606_v41 = vmax.f32 %v2574_v19, 0.0 }
 0x562   : > { %v2573_v39 = vadd.f32 %v5481_v35, %v2489_v22  ;;  %v2604_v47 = vmax.f32 %v2572_v55, 0.0 }
 0x563   : > { %v2607_v45 = vmax.f32 %v2575_v56, 0.0 }
 0x564   : > { %v2605_v27 = vmax.f32 %v2573_v39, 0.0 }
 0x565   : > { %v2629_v7 = vpack.c.bf16 %v2607_v45, %v2606_v41 }
 0x566   : > { %v2628_v8 = vpack.c.bf16 %v2605_v27, %v2604_v47 }
 0x568   : > { %4089 = vmatprep.mubr.bf16.mxu0 %v2628_v8 }
 0x569   : > { %4090 = vmatmul.mubr.bf16.gmra.mrb[64].mxu0 %v2629_v7 }
 0x56e   : > { %v4047_v51 = vpop.f32.mrb[36].mxu1 }
 0x56f   : > { %v2578_v23 = vadd.f32 %v4047_v51, %v5481_v35  ;;  %v2502_v15 = vpop.f32.mrb[37].mxu1 }
 0x570   : > { %v2576_v18 = vadd.f32 %v5481_v35, %v2502_v15  ;;  %v4048_v20 = vpop.f32.mrb[38].mxu1 }
 0x571   : > { %v2579_v57 = vadd.f32 %v4048_v20, %v5481_v35  ;;  %v2505_v58 = vpop.f32.mrb[39].mxu1  ;;  %v2610_v60 = vmax.f32 %v2578_v23, 0.0 }
 0x572   : > { %v2577_v59 = vadd.f32 %v5481_v35, %v2505_v58  ;;  %v2608_v62 = vmax.f32 %v2576_v18, 0.0 }
 0x573   : > { %v2611_v61 = vmax.f32 %v2579_v57, 0.0 }
 0x574   : > { %v2609_v63 = vmax.f32 %v2577_v59, 0.0 }
 0x575   : > { %v2631_v32 = vpack.c.bf16 %v2611_v61, %v2610_v60 }
 0x576   : > { %v2630_v34 = vpack.c.bf16 %v2609_v63, %v2608_v62  ;;  %v4051_v36 = vpop.f32.mrb[40].mxu1 }
 0x577   : > { %v2582_v37 = vadd.f32 %v4051_v36, %v5481_v35  ;;  %v2518_v38 = vpop.f32.mrb[41].mxu1 }
 0x578   : > { %v2580_v40 = vadd.f32 %v5481_v35, %v2518_v38  ;;  %v4052_v42 = vpop.f32.mrb[42].mxu1  ;;  %4093 = vmatprep.mubr.bf16.mxu0 %v2630_v34 }
 0x579   : > { %v2583_v43 = vadd.f32 %v4052_v42, %v5481_v35  ;;  %v2521_v44 = vpop.f32.mrb[43].mxu1  ;;  %4094 = vmatmul.mubr.bf16.gmra.mrb[68].mxu0 %v2631_v32  ;;  %v2614_v1 = vmax.f32 %v2582_v37, 0.0 }
 0x57a   : > { %v2581_v0 = vadd.f32 %v5481_v35, %v2521_v44  ;;  %v2612_v25 = vmax.f32 %v2580_v40, 0.0 }
 0x57b   : > { %v2615_v24 = vmax.f32 %v2583_v43, 0.0 }
 0x57c   : > { %v2613_v46 = vmax.f32 %v2581_v0, 0.0 }
 0x57d   : > { %v2633_v2 = vpack.c.bf16 %v2615_v24, %v2614_v1 }
 0x57e   : > { %v2632_v3 = vpack.c.bf16 %v2613_v46, %v2612_v25  ;;  %v4055_v26 = vpop.f32.mrb[44].mxu1 }
 0x57f   : > { %v2586_v48 = vadd.f32 %v4055_v26, %v5481_v35  ;;  %v2534_v4 = vpop.f32.mrb[45].mxu1 }
 0x580   : > { %v2584_v5 = vadd.f32 %v5481_v35, %v2534_v4  ;;  %v4056_v49 = vpop.f32.mrb[46].mxu1  ;;  %4097 = vmatprep.mubr.bf16.mxu0 %v2632_v3 }
 0x581   : > { %v2587_v28 = vadd.f32 %v4056_v49, %v5481_v35  ;;  %v2537_v29 = vpop.f32.mrb[47].mxu1  ;;  %4098 = vmatmul.mubr.bf16.gmra.mrb[72].mxu0 %v2633_v2  ;;  %v2618_v50 = vmax.f32 %v2586_v48, 0.0 }
 0x582   : > { %v2585_v6 = vadd.f32 %v5481_v35, %v2537_v29  ;;  %v2616_v31 = vmax.f32 %v2584_v5, 0.0 }
 0x583   : > { %v2619_v30 = vmax.f32 %v2587_v28, 0.0 }
 0x584   : > { %v2617_v9 = vmax.f32 %v2585_v6, 0.0 }
 0x585   : > { %v2635_v52 = vpack.c.bf16 %v2619_v30, %v2618_v50 }
 0x586   : > { %v2634_v10 = vpack.c.bf16 %v2617_v9, %v2616_v31 }
 0x588   : > { %4101 = vmatprep.mubr.bf16.mxu0 %v2634_v10 }
 0x589   : > { %4102 = vmatmul.mubr.bf16.gmra.mrb[76].mxu0 %v2635_v52 }
 0x5fc   : > { %v4075_v54 = vpop.f32.mrb[48].mxu0 }
 0x5fd   : > { %v5521_v12 = vadd.f32 %v4075_v54, %v5518_v11  ;;  %v2741_v13 = vpop.f32.mrb[49].mxu0 }
 0x5fe   : > { %v5524_v35 = vadd.f32 %v5518_v11, %v2741_v13  ;;  %v4076_v14 = vpop.f32.mrb[50].mxu0 }
 0x5ff   : > { %2872 = vmax.xlane.f32.xlu1 %v5521_v12  ;;  %v2744_v16 = vpop.f32.mrb[51].mxu0  ;;  %v5529_v17 = vadd.f32 %v4076_v14, %v5518_v11 }
 0x600   : > { %2868 = vmax.xlane.f32.xlu0 %v5524_v35  ;;  %v5532_v53 = vadd.f32 %v5518_v11, %v2744_v16 }
 0x603   : > { %2874 = vmax.xlane.f32.xlu1 %v5529_v17 }
 0x604   : > { %2870 = vmax.xlane.f32.xlu0 %v5532_v53 }
 0x60c   : > { %v4079_v19 = vpop.f32.mrb[52].mxu0 }
 0x60d   : > { %v5537_v21 = vadd.f32 %v4079_v19, %v5518_v11  ;;  %v2757_v55 = vpop.f32.mrb[53].mxu0 }
 0x60e   : > { %v4080_v33 = vpop.f32.mrb[54].mxu0  ;;  %v5544_v39 = vadd.f32 %v5518_v11, %v2757_v55 }
 0x60f   : > { %v5540_v56 = vadd.f32 %v4080_v33, %v5518_v11  ;;  %2880 = vmax.xlane.f32.xlu0 %v5537_v21  ;;  %v2760_v22 = vpop.f32.mrb[55].mxu0 }
 0x610   : > { %v5548_v41 = vadd.f32 %v5518_v11, %v2760_v22 }
 0x611   : > { %2882 = vmax.xlane.f32.xlu1 %v5540_v56 }
 0x613   : > { %2876 = vmax.xlane.f32.xlu0 %v5544_v39 }
 0x615   : > { %2878 = vmax.xlane.f32.xlu1 %v5548_v41 }
 0x61c   : > { %v4083_v45 = vpop.f32.mrb[56].mxu0 }
 0x61d   : > { %v5553_v47 = vadd.f32 %v4083_v45, %v5518_v11  ;;  %v2773_v27 = vpop.f32.mrb[57].mxu0 }
 0x61e   : > { %v4084_v7 = vpop.f32.mrb[58].mxu0  ;;  %v5560_v23 = vadd.f32 %v5518_v11, %v2773_v27 }
 0x61f   : > { %v5556_v8 = vadd.f32 %v4084_v7, %v5518_v11  ;;  %2888 = vmax.xlane.f32.xlu0 %v5553_v47  ;;  %v2776_v51 = vpop.f32.mrb[59].mxu0 }
 0x620   : > { %v5564_v15 = vadd.f32 %v5518_v11, %v2776_v51 }
 0x621   : > { %2890 = vmax.xlane.f32.xlu1 %v5556_v8 }
 0x623   : > { %2884 = vmax.xlane.f32.xlu0 %v5560_v23 }
 0x625   : > { %2886 = vmax.xlane.f32.xlu1 %v5564_v15 }
 0x62c   : > { %v4087_v18 = vpop.f32.mrb[60].mxu0 }
 0x62d   : > { %v5569_v20 = vadd.f32 %v4087_v18, %v5518_v11  ;;  %v2789_v57 = vpop.f32.mrb[61].mxu0 }
 0x62e   : > { %v4088_v58 = vpop.f32.mrb[62].mxu0  ;;  %v5576_v61 = vadd.f32 %v5518_v11, %v2789_v57 }
 0x62f   : > { %v5572_v59 = vadd.f32 %v4088_v58, %v5518_v11  ;;  %2896 = vmax.xlane.f32.xlu0 %v5569_v20  ;;  %v2792_v60 = vpop.f32.mrb[63].mxu0 }
 0x630   : > { %v5580_v62 = vadd.f32 %v5518_v11, %v2792_v60 }
 0x631   : > { %2898 = vmax.xlane.f32.xlu1 %v5572_v59 }
 0x633   : > { %2892 = vmax.xlane.f32.xlu0 %v5576_v61 }
 0x635   : > { %2894 = vmax.xlane.f32.xlu1 %v5580_v62 }
 0x63c   : > { %v4091_v63 = vpop.f32.mrb[64].mxu0 }
 0x63d   : > { %v5585_v32 = vadd.f32 %v4091_v63, %v5518_v11  ;;  %v2805_v34 = vpop.f32.mrb[65].mxu0 }
 0x63e   : > { %v4092_v36 = vpop.f32.mrb[66].mxu0  ;;  %v5592_v40 = vadd.f32 %v5518_v11, %v2805_v34 }
 0x63f   : > { %v5588_v37 = vadd.f32 %v4092_v36, %v5518_v11  ;;  %2904 = vmax.xlane.f32.xlu0 %v5585_v32  ;;  %v2808_v38 = vpop.f32.mrb[67].mxu0 }
 0x640   : > { %v5596_v42 = vadd.f32 %v5518_v11, %v2808_v38 }
 0x641   : > { %2906 = vmax.xlane.f32.xlu1 %v5588_v37 }
 0x643   : > { %2900 = vmax.xlane.f32.xlu0 %v5592_v40 }
 0x645   : > { %2902 = vmax.xlane.f32.xlu1 %v5596_v42 }
 0x64c   : > { %v4095_v43 = vpop.f32.mrb[68].mxu0 }
 0x64d   : > { %v5601_v44 = vadd.f32 %v4095_v43, %v5518_v11  ;;  %v2821_v0 = vpop.f32.mrb[69].mxu0 }
 0x64e   : > { %v4096_v1 = vpop.f32.mrb[70].mxu0  ;;  %v5608_v46 = vadd.f32 %v5518_v11, %v2821_v0 }
 0x64f   : > { %v5604_v24 = vadd.f32 %v4096_v1, %v5518_v11  ;;  %2912 = vmax.xlane.f32.xlu0 %v5601_v44  ;;  %v2824_v25 = vpop.f32.mrb[71].mxu0 }
 0x650   : > { %v5612_v2 = vadd.f32 %v5518_v11, %v2824_v25 }
 0x651   : > { %2914 = vmax.xlane.f32.xlu1 %v5604_v24 }
 0x653   : > { %2908 = vmax.xlane.f32.xlu0 %v5608_v46 }
 0x654   : > { %v4099_v3 = vpop.f32.mrb[72].mxu0 }
 0x655   : > { %v5616_v26 = vadd.f32 %v4099_v3, %v5518_v11  ;;  %2910 = vmax.xlane.f32.xlu1 %v5612_v2  ;;  %v2837_v48 = vpop.f32.mrb[73].mxu0 }
 0x656   : > { %v4100_v4 = vpop.f32.mrb[74].mxu0  ;;  %v5624_v28 = vadd.f32 %v5518_v11, %v2837_v48 }
 0x657   : > { %v5620_v5 = vadd.f32 %v4100_v4, %v5518_v11  ;;  %2920 = vmax.xlane.f32.xlu0 %v5616_v26  ;;  %v2840_v49 = vpop.f32.mrb[75].mxu0 }
 0x658   : > { %v5628_v29 = vadd.f32 %v5518_v11, %v2840_v49 }
 0x659   : > { %2922 = vmax.xlane.f32.xlu1 %v5620_v5 }
 0x65b   : > { %2916 = vmax.xlane.f32.xlu0 %v5624_v28 }
 0x65c   : > { %v4103_v6 = vpop.f32.mrb[76].mxu0 }
 0x65d   : > { %2918 = vmax.xlane.f32.xlu1 %v5628_v29  ;;  %v2853_v50 = vpop.f32.mrb[77].mxu0  ;;  %v5640_v10 = vadd.f32 %v4103_v6, %v5518_v11 }
 0x65e   : > { %v5633_v30 = vadd.f32 %v5518_v11, %v2853_v50  ;;  %v4104_v31 = vpop.f32.mrb[78].mxu0 }
 0x65f   : > { %v2856_v9 = vpop.f32.mrb[79].mxu0  ;;  %v5644_v54 = vadd.f32 %v4104_v31, %v5518_v11 }
 0x660   : > { %v5636_v52 = vadd.f32 %v5518_v11, %v2856_v9  ;;  %2924 = vmax.xlane.f32.xlu0 %v5633_v30 }
 0x662   : > { %2926 = vmax.xlane.f32.xlu1 %v5636_v52 }
 0x664   : > { %2928 = vmax.xlane.f32.xlu0 %v5640_v10 }
 0x666   : > { %2930 = vmax.xlane.f32.xlu1 %v5644_v54 }
 0x68c   : > { %v2873_v13 = vpop.xlane.xlu1 %2872 }
 0x68d   : > { %v5649_v14 = vsub.f32 %v5521_v12, %v2873_v13  ;;  %v2869_v16 = vpop.xlane.xlu0 %2868 }
 0x68e   : > { %v5652_v19 = vsub.f32 %v5524_v35, %v2869_v16 }
 0x68f   : > { %v2968_v55 = vmul.f32 1.442695, %v5649_v14 }
 0x690   : > { %v2964_v33 = vmul.f32 1.442695, %v5652_v19  ;;  %v2875_v22 = vpop.xlane.xlu1 %2874 }
 0x691   : > { %4376 = vpow2.f32 %v2968_v55  ;;  %v5657_v11 = vsub.f32 %v5529_v17, %v2875_v22  ;;  %v2871_v45 = vpop.xlane.xlu0 %2870 }
 0x692   : > { %v5660_v27 = vsub.f32 %v5532_v53, %v2871_v45  ;;  %4378 = vpow2.f32 %v2964_v33 }
 0x693   : > { %v2970_v12 = vmul.f32 1.442695, %v5657_v11 }
 0x694   : > { %v2966_v35 = vmul.f32 1.442695, %v5660_v27 }
 0x695   : > { %4380 = vpow2.f32 %v2970_v12 }
 0x696   : > { %4382 = vpow2.f32 %v2966_v35 }
 0x69b   : > { %v4377_v7 = vpop.eup %4376 }
 0x69c   : > { %v2881_v51 = vpop.xlane.xlu0 %2880  ;;  %3032 = vadd.xlane.f32.xlu0 %v4377_v7  ;;  %v4379_v57 = vpop.eup %4378 }
 0x69d   : > { %v5665_v18 = vsub.f32 %v5537_v21, %v2881_v51 }
 0x69e   : > { %v2883_v17 = vpop.xlane.xlu1 %2882 }
 0x69f   : > { %v4381_v58 = vpop.eup %4380  ;;  %v2976_v60 = vmul.f32 1.442695, %v5665_v18  ;;  %v5669_v53 = vsub.f32 %v5540_v56, %v2883_v17 }
 0x6a0   : > { %v2877_v63 = vpop.xlane.xlu0 %2876  ;;  %3034 = vadd.xlane.f32.xlu1 %v4381_v58  ;;  %3028 = vadd.xlane.f32.xlu0 %v4379_v57  ;;  %v4383_v21 = vpop.eup %4382 }
 0x6a1   : > { %4384 = vpow2.f32 %v2976_v60  ;;  %v2978_v34 = vmul.f32 1.442695, %v5669_v53  ;;  %v5673_v36 = vsub.f32 %v5544_v39, %v2877_v63 }
 0x6a2   : > { %v2879_v38 = vpop.xlane.xlu1 %2878 }
 0x6a3   : > { %4386 = vpow2.f32 %v2978_v34  ;;  %v2972_v43 = vmul.f32 1.442695, %v5673_v36  ;;  %v5677_v0 = vsub.f32 %v5548_v41, %v2879_v38 }
 0x6a4   : > { %3030 = vadd.xlane.f32.xlu1 %v4383_v21 }
 0x6a5   : > { %4388 = vpow2.f32 %v2972_v43  ;;  %v2974_v56 = vmul.f32 1.442695, %v5677_v0 }
 0x6a7   : > { %4390 = vpow2.f32 %v2974_v56 }
 0x6ab   : > { %v4385_v1 = vpop.eup %4384 }
 0x6ac   : > { %v2889_v25 = vpop.xlane.xlu0 %2888  ;;  %3040 = vadd.xlane.f32.xlu0 %v4385_v1 }
 0x6ad   : > { %v4387_v3 = vpop.eup %4386  ;;  %v5681_v39 = vsub.f32 %v5553_v47, %v2889_v25 }
 0x6ae   : > { %v2891_v48 = vpop.xlane.xlu1 %2890  ;;  %3042 = vadd.xlane.f32.xlu1 %v4387_v3 }
 0x6af   : > { %v4389_v4 = vpop.eup %4388  ;;  %v2984_v49 = vmul.f32 1.442695, %v5681_v39  ;;  %v5685_v41 = vsub.f32 %v5556_v8, %v2891_v48 }
 0x6b0   : > { %v2885_v6 = vpop.xlane.xlu0 %2884  ;;  %3036 = vadd.xlane.f32.xlu0 %v4389_v4 }
 0x6b1   : > { %v4391_v50 = vpop.eup %4390  ;;  %4392 = vpow2.f32 %v2984_v49  ;;  %v2986_v31 = vmul.f32 1.442695, %v5685_v41  ;;  %v5689_v9 = vsub.f32 %v5560_v23, %v2885_v6 }
 0x6b2   : > { %v2887_v13 = vpop.xlane.xlu1 %2886  ;;  %3038 = vadd.xlane.f32.xlu1 %v4391_v50 }
 0x6b3   : > { %4394 = vpow2.f32 %v2986_v31  ;;  %v2980_v47 = vmul.f32 1.442695, %v5689_v9  ;;  %v5693_v16 = vsub.f32 %v5564_v15, %v2887_v13 }
 0x6b5   : > { %4396 = vpow2.f32 %v2980_v47  ;;  %v2982_v8 = vmul.f32 1.442695, %v5693_v16 }
 0x6b7   : > { %4398 = vpow2.f32 %v2982_v8 }
 0x6bb   : > { %v4393_v55 = vpop.eup %4392 }
 0x6bc   : > { %v2897_v33 = vpop.xlane.xlu0 %2896  ;;  %3048 = vadd.xlane.f32.xlu0 %v4393_v55 }
 0x6bd   : > { %v4395_v22 = vpop.eup %4394  ;;  %v5697_v45 = vsub.f32 %v5569_v20, %v2897_v33 }
 0x6be   : > { %v2899_v23 = vpop.xlane.xlu1 %2898  ;;  %3050 = vadd.xlane.f32.xlu1 %v4395_v22 }
 0x6bf   : > { %v4397_v12 = vpop.eup %4396  ;;  %v2992_v35 = vmul.f32 1.442695, %v5697_v45  ;;  %v5701_v7 = vsub.f32 %v5572_v59, %v2899_v23 }
 0x6c0   : > { %v2893_v15 = vpop.xlane.xlu0 %2892  ;;  %3044 = vadd.xlane.f32.xlu0 %v4397_v12 }
 0x6c1   : > { %v4399_v51 = vpop.eup %4398  ;;  %4400 = vpow2.f32 %v2992_v35  ;;  %v2994_v57 = vmul.f32 1.442695, %v5701_v7  ;;  %v5705_v17 = vsub.f32 %v5576_v61, %v2893_v15 }
 0x6c2   : > { %v2895_v58 = vpop.xlane.xlu1 %2894  ;;  %3046 = vadd.xlane.f32.xlu1 %v4399_v51 }
 0x6c3   : > { %4402 = vpow2.f32 %v2994_v57  ;;  %v2988_v20 = vmul.f32 1.442695, %v5705_v17  ;;  %v5709_v60 = vsub.f32 %v5580_v62, %v2895_v58 }
 0x6c5   : > { %4404 = vpow2.f32 %v2988_v20  ;;  %v2990_v59 = vmul.f32 1.442695, %v5709_v60 }
 0x6c7   : > { %4406 = vpow2.f32 %v2990_v59 }
 0x6cb   : > { %v4401_v63 = vpop.eup %4400 }
 0x6cc   : > { %v2905_v34 = vpop.xlane.xlu0 %2904  ;;  %3056 = vadd.xlane.f32.xlu0 %v4401_v63 }
 0x6cd   : > { %v4403_v38 = vpop.eup %4402  ;;  %v5713_v21 = vsub.f32 %v5585_v32, %v2905_v34 }
 0x6ce   : > { %v2907_v61 = vpop.xlane.xlu1 %2906  ;;  %3058 = vadd.xlane.f32.xlu1 %v4403_v38 }
 0x6cf   : > { %v4405_v43 = vpop.eup %4404  ;;  %v3000_v56 = vmul.f32 1.442695, %v5713_v21  ;;  %v5717_v1 = vsub.f32 %v5588_v37, %v2907_v61 }
 0x6d0   : > { %v2901_v62 = vpop.xlane.xlu0 %2900  ;;  %3052 = vadd.xlane.f32.xlu0 %v4405_v43 }
 0x6d1   : > { %v4407_v25 = vpop.eup %4406  ;;  %4408 = vpow2.f32 %v3000_v56  ;;  %v3002_v3 = vmul.f32 1.442695, %v5717_v1  ;;  %v5721_v48 = vsub.f32 %v5592_v40, %v2901_v62 }
 0x6d2   : > { %v2903_v4 = vpop.xlane.xlu1 %2902  ;;  %3054 = vadd.xlane.f32.xlu1 %v4407_v25 }
 0x6d3   : > { %4410 = vpow2.f32 %v3002_v3  ;;  %v2996_v32 = vmul.f32 1.442695, %v5721_v48  ;;  %v5725_v49 = vsub.f32 %v5596_v42, %v2903_v4 }
 0x6d5   : > { %4412 = vpow2.f32 %v2996_v32  ;;  %v2998_v37 = vmul.f32 1.442695, %v5725_v49 }
 0x6d7   : > { %4414 = vpow2.f32 %v2998_v37 }
 0x6db   : > { %v4409_v6 = vpop.eup %4408 }
 0x6dc   : > { %v2913_v50 = vpop.xlane.xlu0 %2912  ;;  %3064 = vadd.xlane.f32.xlu0 %v4409_v6 }
 0x6dd   : > { %v4411_v31 = vpop.eup %4410  ;;  %v5729_v13 = vsub.f32 %v5601_v44, %v2913_v50 }
 0x6de   : > { %v2915_v40 = vpop.xlane.xlu1 %2914  ;;  %3066 = vadd.xlane.f32.xlu1 %v4411_v31 }
 0x6df   : > { %v4413_v47 = vpop.eup %4412  ;;  %v3008_v8 = vmul.f32 1.442695, %v5729_v13  ;;  %v5733_v55 = vsub.f32 %v5604_v24, %v2915_v40 }
 0x6e0   : > { %v2909_v42 = vpop.xlane.xlu0 %2908  ;;  %3060 = vadd.xlane.f32.xlu0 %v4413_v47 }
 0x6e1   : > { %v4415_v33 = vpop.eup %4414  ;;  %4416 = vpow2.f32 %v3008_v8  ;;  %v3010_v22 = vmul.f32 1.442695, %v5733_v55  ;;  %v5737_v23 = vsub.f32 %v5608_v46, %v2909_v42 }
 0x6e2   : > { %v2911_v12 = vpop.xlane.xlu1 %2910  ;;  %3062 = vadd.xlane.f32.xlu1 %v4415_v33 }
 0x6e3   : > { %4418 = vpow2.f32 %v3010_v22  ;;  %v3004_v44 = vmul.f32 1.442695, %v5737_v23  ;;  %v5741_v35 = vsub.f32 %v5612_v2, %v2911_v12 }
 0x6e4   : > { %v2921_v15 = vpop.xlane.xlu0 %2920 }
 0x6e5   : > { %4420 = vpow2.f32 %v3004_v44  ;;  %v3006_v24 = vmul.f32 1.442695, %v5741_v35  ;;  %v5745_v51 = vsub.f32 %v5616_v26, %v2921_v15 }
 0x6e6   : > { %v2923_v57 = vpop.xlane.xlu1 %2922 }
 0x6e7   : > { %4422 = vpow2.f32 %v3006_v24  ;;  %v3016_v46 = vmul.f32 1.442695, %v5745_v51  ;;  %v5749_v58 = vsub.f32 %v5620_v5, %v2923_v57 }
 0x6e8   : > { %v2917_v20 = vpop.xlane.xlu0 %2916 }
 0x6e9   : > { %4424 = vpow2.f32 %v3016_v46  ;;  %v3018_v59 = vmul.f32 1.442695, %v5749_v58  ;;  %v5753_v2 = vsub.f32 %v5624_v28, %v2917_v20 }
 0x6ea   : > { %v2919_v63 = vpop.xlane.xlu1 %2918 }
 0x6eb   : > { %v4417_v34 = vpop.eup %4416  ;;  %4426 = vpow2.f32 %v3018_v59  ;;  %v3012_v26 = vmul.f32 1.442695, %v5753_v2  ;;  %v5757_v38 = vsub.f32 %v5628_v29, %v2919_v63 }
 0x6ec   : > { %3072 = vadd.xlane.f32.xlu0 %v4417_v34 }
 0x6ed   : > { %v4419_v61 = vpop.eup %4418  ;;  %4428 = vpow2.f32 %v3012_v26  ;;  %v3014_v5 = vmul.f32 1.442695, %v5757_v38  ;;  %v2925_v43 = vpop.xlane.xlu0 %2924 }
 0x6ee   : > { %v5761_v56 = vsub.f32 %v5633_v30, %v2925_v43  ;;  %3074 = vadd.xlane.f32.xlu1 %v4419_v61 }
 0x6ef   : > { %v4421_v28 = vpop.eup %4420  ;;  %4430 = vpow2.f32 %v3014_v5  ;;  %v2927_v62 = vpop.xlane.xlu1 %2926 }
 0x6f0   : > { %v3020_v25 = vmul.f32 1.442695, %v5761_v56  ;;  %v5765_v3 = vsub.f32 %v5636_v52, %v2927_v62  ;;  %3068 = vadd.xlane.f32.xlu0 %v4421_v28 }
 0x6f1   : > { %v4423_v29 = vpop.eup %4422  ;;  %v2929_v4 = vpop.xlane.xlu0 %2928 }
 0x6f2   : > { %4432 = vpow2.f32 %v3020_v25  ;;  %v3022_v32 = vmul.f32 1.442695, %v5765_v3  ;;  %v5769_v37 = vsub.f32 %v5640_v10, %v2929_v4  ;;  %3070 = vadd.xlane.f32.xlu1 %v4423_v29 }
 0x6f3   : > { %v4425_v30 = vpop.eup %4424  ;;  %v2931_v6 = vpop.xlane.xlu1 %2930 }
 0x6f4   : > { %4434 = vpow2.f32 %v3022_v32  ;;  %v3024_v50 = vmul.f32 1.442695, %v5769_v37  ;;  %v5773_v31 = vsub.f32 %v5644_v54, %v2931_v6  ;;  %3080 = vadd.xlane.f32.xlu0 %v4425_v30 }
 0x6f5   : > { %v4427_v52 = vpop.eup %4426 }
 0x6f6   : > { %4436 = vpow2.f32 %v3024_v50  ;;  %v3026_v40 = vmul.f32 1.442695, %v5773_v31  ;;  %3082 = vadd.xlane.f32.xlu1 %v4427_v52 }
 0x6f7   : > { %v4429_v47 = vpop.eup %4428 }
 0x6f8   : > { %4438 = vpow2.f32 %v3026_v40  ;;  %3076 = vadd.xlane.f32.xlu0 %v4429_v47 }
 0x6f9   : > { %v4431_v10 = vpop.eup %4430 }
 0x6fa   : > { %3078 = vadd.xlane.f32.xlu1 %v4431_v10 }
 0x6fc   : > { %v4433_v8 = vpop.eup %4432 }
 0x6fd   : > { %3084 = vadd.xlane.f32.xlu0 %v4433_v8 }
 0x6fe   : > { %v4435_v42 = vpop.eup %4434 }
 0x6ff   : > { %3086 = vadd.xlane.f32.xlu1 %v4435_v42 }
 0x700   : > { %v4437_v33 = vpop.eup %4436 }
 0x701   : > { %3088 = vadd.xlane.f32.xlu0 %v4437_v33 }
 0x702   : > { %v4439_v22 = vpop.eup %4438 }
 0x703   : > { %3090 = vadd.xlane.f32.xlu1 %v4439_v22 }
 0x729   : > { %v3033_v54 = vpop.xlane.xlu0 %3032 }
 0x72a   : > { %4440 = vlog2.f32 %v3033_v54 }
 0x72d   : > { %v3035_v12 = vpop.xlane.xlu1 %3034  ;;  %v3029_v44 = vpop.xlane.xlu0 %3028 }
 0x72e   : > { %4442 = vlog2.f32 %v3035_v12 }
 0x72f   : > { %4444 = vlog2.f32 %v3029_v44 }
 0x731   : > { %v3031_v15 = vpop.xlane.xlu1 %3030 }
 0x732   : > { %4446 = vlog2.f32 %v3031_v15 }
 0x734   : > { %v4441_v24 = vpop.eup %4440 }
 0x735   : > { %v3097_v57 = vmul.f32 0.6931472, %v4441_v24 }
 0x737   : > { %v3158_v46 = vsub.f32 %v5649_v14, %v3097_v57 }
 0x738   : > { %v4443_v20 = vpop.eup %4442 }
 0x739   : > { %v4445_v59 = vpop.eup %4444  ;;  %3190 = vst [vmem:[#allocation17 + $0x10] sm:$0xff] %v3158_v46  ;;  %v3099_v63 = vmul.f32 0.6931472, %v4443_v20  ;;  %v3041_v34 = vpop.xlane.xlu0 %3040 }
 0x73a   : > { %v3093_v26 = vmul.f32 0.6931472, %v4445_v59  ;;  %4448 = vlog2.f32 %v3041_v34 }
 0x73b   : > { %v3159_v61 = vsub.f32 %v5657_v11, %v3099_v63  ;;  %v3043_v5 = vpop.xlane.xlu1 %3042 }
 0x73c   : > { %v4447_v43 = vpop.eup %4446  ;;  %v3156_v28 = vsub.f32 %v5652_v19, %v3093_v26  ;;  %4450 = vlog2.f32 %v3043_v5 }
 0x73d   : > { %3191 = vst [vmem:[#allocation17 + $0x18] sm:$0xff] %v3159_v61  ;;  %v3095_v62 = vmul.f32 0.6931472, %v4447_v43  ;;  %v3037_v25 = vpop.xlane.xlu0 %3036 }
 0x73e   : > { %3188 = vst [vmem:[#allocation17] sm:$0xff] %v3156_v28  ;;  %4452 = vlog2.f32 %v3037_v25 }
 0x73f   : > { %v3157_v14 = vsub.f32 %v5660_v27, %v3095_v62  ;;  %v3039_v29 = vpop.xlane.xlu1 %3038 }
 0x740   : > { %4454 = vlog2.f32 %v3039_v29 }
 0x741   : > { %3189 = vst [vmem:[#allocation17 + $0x8] sm:$0xff] %v3157_v14 }
 0x744   : > { %v4449_v4 = vpop.eup %4448 }
 0x745   : > { %v3105_v32 = vmul.f32 0.6931472, %v4449_v4 }
 0x746   : > { %v4451_v30 = vpop.eup %4450 }
 0x747   : > { %v3162_v11 = vsub.f32 %v5665_v18, %v3105_v32  ;;  %v3107_v6 = vmul.f32 0.6931472, %v4451_v30 }
 0x748   : > { %v4453_v50 = vpop.eup %4452 }
 0x749   : > { %3194 = vst [vmem:[#allocation17 + $0x30] sm:$0xff] %v3162_v11  ;;  %v3163_v19 = vsub.f32 %v5669_v53, %v3107_v6  ;;  %v3101_v52 = vmul.f32 0.6931472, %v4453_v50  ;;  %v3049_v40 = vpop.xlane.xlu0 %3048 }
 0x74a   : > { %v4455_v47 = vpop.eup %4454  ;;  %4456 = vlog2.f32 %v3049_v40 }
 0x74b   : > { %3195 = vst [vmem:[#allocation17 + $0x38] sm:$0xff] %v3163_v19  ;;  %v3160_v27 = vsub.f32 %v5673_v36, %v3101_v52  ;;  %v3103_v10 = vmul.f32 0.6931472, %v4455_v47  ;;  %v3051_v8 = vpop.xlane.xlu1 %3050 }
 0x74c   : > { %4458 = vlog2.f32 %v3051_v8 }
 0x74d   : > { %3192 = vst [vmem:[#allocation17 + $0x20] sm:$0xff] %v3160_v27  ;;  %v3161_v42 = vsub.f32 %v5677_v0, %v3103_v10  ;;  %v3045_v33 = vpop.xlane.xlu0 %3044 }
 0x74e   : > { %4460 = vlog2.f32 %v3045_v33 }
 0x74f   : > { %3193 = vst [vmem:[#allocation17 + $0x28] sm:$0xff] %v3161_v42  ;;  %v3047_v18 = vpop.xlane.xlu1 %3046 }
 0x750   : > { %4462 = vlog2.f32 %v3047_v18 }
 0x754   : > { %v4457_v22 = vpop.eup %4456 }
 0x755   : > { %v3113_v53 = vmul.f32 0.6931472, %v4457_v22 }
 0x756   : > { %v4459_v54 = vpop.eup %4458 }
 0x757   : > { %v3166_v12 = vsub.f32 %v5681_v39, %v3113_v53  ;;  %v3115_v44 = vmul.f32 0.6931472, %v4459_v54 }
 0x758   : > { %v4461_v15 = vpop.eup %4460 }
 0x759   : > { %3198 = vst [vmem:[#allocation17 + $0x50] sm:$0xff] %v3166_v12  ;;  %v3167_v36 = vsub.f32 %v5685_v41, %v3115_v44  ;;  %v3109_v24 = vmul.f32 0.6931472, %v4461_v15  ;;  %v3057_v57 = vpop.xlane.xlu0 %3056 }
 0x75a   : > { %v4463_v46 = vpop.eup %4462  ;;  %4464 = vlog2.f32 %v3057_v57 }
 0x75b   : > { %3199 = vst [vmem:[#allocation17 + $0x58] sm:$0xff] %v3167_v36  ;;  %v3164_v0 = vsub.f32 %v5689_v9, %v3109_v24  ;;  %v3111_v20 = vmul.f32 0.6931472, %v4463_v46  ;;  %v3059_v59 = vpop.xlane.xlu1 %3058 }
 0x75c   : > { %4466 = vlog2.f32 %v3059_v59 }
 0x75d   : > { %3196 = vst [vmem:[#allocation17 + $0x40] sm:$0xff] %v3164_v0  ;;  %v3165_v63 = vsub.f32 %v5693_v16, %v3111_v20  ;;  %v3053_v34 = vpop.xlane.xlu0 %3052 }
 0x75e   : > { %4468 = vlog2.f32 %v3053_v34 }
 0x75f   : > { %3197 = vst [vmem:[#allocation17 + $0x48] sm:$0xff] %v3165_v63  ;;  %v3055_v39 = vpop.xlane.xlu1 %3054 }
 0x760   : > { %4470 = vlog2.f32 %v3055_v39 }
 0x764   : > { %v4465_v26 = vpop.eup %4464 }
 0x765   : > { %v3121_v41 = vmul.f32 0.6931472, %v4465_v26 }
 0x766   : > { %v4467_v61 = vpop.eup %4466 }
 0x767   : > { %v3170_v5 = vsub.f32 %v5697_v45, %v3121_v41  ;;  %v3123_v43 = vmul.f32 0.6931472, %v4467_v61 }
 0x768   : > { %v4469_v28 = vpop.eup %4468 }
 0x769   : > { %3202 = vst [vmem:[#allocation17 + $0x70] sm:$0xff] %v3170_v5  ;;  %v3171_v9 = vsub.f32 %v5701_v7, %v3123_v43  ;;  %v3117_v62 = vmul.f32 0.6931472, %v4469_v28  ;;  %v3065_v25 = vpop.xlane.xlu0 %3064 }
 0x76a   : > { %v4471_v14 = vpop.eup %4470  ;;  %4472 = vlog2.f32 %v3065_v25 }
 0x76b   : > { %3203 = vst [vmem:[#allocation17 + $0x78] sm:$0xff] %v3171_v9  ;;  %v3168_v16 = vsub.f32 %v5705_v17, %v3117_v62  ;;  %v3119_v29 = vmul.f32 0.6931472, %v4471_v14  ;;  %v3067_v4 = vpop.xlane.xlu1 %3066 }
 0x76c   : > { %4474 = vlog2.f32 %v3067_v4 }
 0x76d   : > { %3200 = vst [vmem:[#allocation17 + $0x60] sm:$0xff] %v3168_v16  ;;  %v3169_v32 = vsub.f32 %v5709_v60, %v3119_v29  ;;  %v3061_v30 = vpop.xlane.xlu0 %3060 }
 0x76e   : > { %4476 = vlog2.f32 %v3061_v30 }
 0x76f   : > { %3201 = vst [vmem:[#allocation17 + $0x68] sm:$0xff] %v3169_v32  ;;  %v3063_v45 = vpop.xlane.xlu1 %3062 }
 0x770   : > { %4478 = vlog2.f32 %v3063_v45 }
 0x774   : > { %v4473_v11 = vpop.eup %4472 }
 0x775   : > { %v3129_v7 = vmul.f32 0.6931472, %v4473_v11 }
 0x776   : > { %v4475_v6 = vpop.eup %4474 }
 0x777   : > { %v3174_v50 = vsub.f32 %v5713_v21, %v3129_v7  ;;  %v3131_v19 = vmul.f32 0.6931472, %v4475_v6 }
 0x778   : > { %v4477_v52 = vpop.eup %4476 }
 0x779   : > { %3206 = vst [vmem:[#allocation17 + $0x90] sm:$0xff] %v3174_v50  ;;  %v3175_v17 = vsub.f32 %v5717_v1, %v3131_v19  ;;  %v3125_v40 = vmul.f32 0.6931472, %v4477_v52  ;;  %v3073_v47 = vpop.xlane.xlu0 %3072 }
 0x77a   : > { %v4479_v27 = vpop.eup %4478  ;;  %4480 = vlog2.f32 %v3073_v47 }
 0x77b   : > { %3207 = vst [vmem:[#allocation17 + $0x98] sm:$0xff] %v3175_v17  ;;  %v3172_v60 = vsub.f32 %v5721_v48, %v3125_v40  ;;  %v3127_v10 = vmul.f32 0.6931472, %v4479_v27  ;;  %v3075_v8 = vpop.xlane.xlu1 %3074 }
 0x77c   : > { %4482 = vlog2.f32 %v3075_v8 }
 0x77d   : > { %3204 = vst [vmem:[#allocation17 + $0x80] sm:$0xff] %v3172_v60  ;;  %v3173_v42 = vsub.f32 %v5725_v49, %v3127_v10  ;;  %v3069_v33 = vpop.xlane.xlu0 %3068 }
 0x77e   : > { %4484 = vlog2.f32 %v3069_v33 }
 0x77f   : > { %3205 = vst [vmem:[#allocation17 + $0x88] sm:$0xff] %v3173_v42  ;;  %v3071_v21 = vpop.xlane.xlu1 %3070 }
 0x780   : > { %4486 = vlog2.f32 %v3071_v21 }
 0x781   : > { %v3081_v18 = vpop.xlane.xlu0 %3080 }
 0x782   : > { %4488 = vlog2.f32 %v3081_v18 }
 0x783   : > { %v3083_v1 = vpop.xlane.xlu1 %3082 }
 0x784   : > { %v4481_v22 = vpop.eup %4480  ;;  %4490 = vlog2.f32 %v3083_v1 }
 0x785   : > { %v3137_v53 = vmul.f32 0.6931472, %v4481_v22  ;;  %v3077_v54 = vpop.xlane.xlu0 %3076 }
 0x786   : > { %v4483_v12 = vpop.eup %4482  ;;  %4492 = vlog2.f32 %v3077_v54 }
 0x787   : > { %v3178_v48 = vsub.f32 %v5729_v13, %v3137_v53  ;;  %v3139_v44 = vmul.f32 0.6931472, %v4483_v12  ;;  %v3079_v15 = vpop.xlane.xlu1 %3078 }
 0x788   : > { %v4485_v36 = vpop.eup %4484  ;;  %4494 = vlog2.f32 %v3079_v15 }
 0x789   : > { %3210 = vst [vmem:[#allocation17 + $0xb0] sm:$0xff] %v3178_v48  ;;  %v3179_v49 = vsub.f32 %v5733_v55, %v3139_v44  ;;  %v3133_v24 = vmul.f32 0.6931472, %v4485_v36 }
 0x78a   : > { %v4487_v57 = vpop.eup %4486  ;;  %v3085_v46 = vpop.xlane.xlu0 %3084 }
 0x78b   : > { %3211 = vst [vmem:[#allocation17 + $0xb8] sm:$0xff] %v3179_v49  ;;  %v3176_v0 = vsub.f32 %v5737_v23, %v3133_v24  ;;  %v3135_v20 = vmul.f32 0.6931472, %v4487_v57  ;;  %4496 = vlog2.f32 %v3085_v46 }
 0x78c   : > { %v4489_v59 = vpop.eup %4488  ;;  %v3087_v63 = vpop.xlane.xlu1 %3086 }
 0x78d   : > { %3208 = vst [vmem:[#allocation17 + $0xa0] sm:$0xff] %v3176_v0  ;;  %v3177_v13 = vsub.f32 %v5741_v35, %v3135_v20  ;;  %v3145_v34 = vmul.f32 0.6931472, %v4489_v59  ;;  %4498 = vlog2.f32 %v3087_v63 }
 0x78e   : > { %v4491_v39 = vpop.eup %4490  ;;  %v3089_v26 = vpop.xlane.xlu0 %3088 }
 0x78f   : > { %3209 = vst [vmem:[#allocation17 + $0xa8] sm:$0xff] %v3177_v13  ;;  %v3182_v55 = vsub.f32 %v5745_v51, %v3145_v34  ;;  %v3147_v41 = vmul.f32 0.6931472, %v4491_v39  ;;  %4500 = vlog2.f32 %v3089_v26 }
 0x790   : > { %v4493_v61 = vpop.eup %4492  ;;  %v3091_v5 = vpop.xlane.xlu1 %3090 }
 0x791   : > { %3214 = vst [vmem:[#allocation17 + $0xd0] sm:$0xff] %v3182_v55  ;;  %v3183_v23 = vsub.f32 %v5749_v58, %v3147_v41  ;;  %v3141_v43 = vmul.f32 0.6931472, %v4493_v61  ;;  %4502 = vlog2.f32 %v3091_v5 }
 0x792   : > { %v4495_v28 = vpop.eup %4494 }
 0x793   : > { %3215 = vst [vmem:[#allocation17 + $0xd8] sm:$0xff] %v3183_v23  ;;  %v3180_v35 = vsub.f32 %v5753_v2, %v3141_v43  ;;  %v3143_v9 = vmul.f32 0.6931472, %v4495_v28 }
 0x795   : > { %v4497_v62 = vpop.eup %4496  ;;  %3212 = vst [vmem:[#allocation17 + $0xc0] sm:$0xff] %v3180_v35  ;;  %v3181_v25 = vsub.f32 %v5757_v38, %v3143_v9 }
 0x796   : > { %v3149_v14 = vmul.f32 0.6931472, %v4497_v62 }
 0x797   : > { %v4499_v51 = vpop.eup %4498  ;;  %3213 = vst [vmem:[#allocation17 + $0xc8] sm:$0xff] %v3181_v25 }
 0x798   : > { %v3184_v16 = vsub.f32 %v5761_v56, %v3149_v14  ;;  %v3151_v29 = vmul.f32 0.6931472, %v4499_v51 }
 0x799   : > { %v4501_v4 = vpop.eup %4500 }
 0x79a   : > { %3216 = vst [vmem:[#allocation17 + $0xe0] sm:$0xff] %v3184_v16  ;;  %v3185_v58 = vsub.f32 %v5765_v3, %v3151_v29  ;;  %v3153_v32 = vmul.f32 0.6931472, %v4501_v4 }
 0x79b   : > { %v4503_v30 = vpop.eup %4502 }
 0x79c   : > { %3217 = vst [vmem:[#allocation17 + $0xe8] sm:$0xff] %v3185_v58  ;;  %v3186_v2 = vsub.f32 %v5769_v37, %v3153_v32  ;;  %v3155_v45 = vmul.f32 0.6931472, %v4503_v30 }
 0x79e   : > { %3218 = vst [vmem:[#allocation17 + $0xf0] sm:$0xff] %v3186_v2  ;;  %v3187_v11 = vsub.f32 %v5773_v31, %v3155_v45 }
 0x7a0   : > { %3219 = vst [vmem:[#allocation17 + $0xf8] sm:$0xff] %v3187_v11 }
 0x7a1 PF: > { %s5883_s30 = sld [smem:[#allocation24_spill]]  ;;  %s4815_s25 = smov [#allocation17]  }
 0x7a2   : > { %s3229_s21 = sshll.u32 %s4815_s25, 4  ;;  %s3230_s21 = int_to_ptr.vmem [resolvable:$true] %s3229_s21 }
 0x7a3   : > { %s4728_s13 = scalar_lea.vmem %s3230_s21, 4096  ;;  %p4735_p8 = scmp.lt.s32.totalorder %s3230_s21, %s3230_s21 }
 0x7a4   : > { %p4729_p1 = scmp.ne.s32.totalorder %s3230_s21, %s4728_s13  ;;  %p4736_p9 = scmp.lt.s32.totalorder %s4728_s13, %s4728_s13 }
 0x7a6   : > { %p4737_p10 = por %p4736_p9, %p4735_p8 }
 0x7a7   : > { %s5884_s12 = sadd.s32 4294967295, %s5883_s30  }
 0x7a8   : > { %p5810_p0 = scmp.eq.s32.totalorder %s5884_s12, 1 }
 0x7aa   : > { %p4730_p4 = pnand %p4729_p1, %p5810_p0 }
 0x7ac   : > { %p4731_p6 = pneg %p4730_p4 }
 0x7ae   : > { %p4738_p11 = pnand %p4737_p10, %p4731_p6 }
 0x7b0   : > { %4741 = shalt.err (!%p4738_p11)
}
 0x7b1   : > { %s5886_s22 = sld [smem:[#allocation28_spill]] }
 0x7b7   : > { %s4742_s14 = scalar_lea.hbm %s5886_s22, 4096 }
 0x7b8   : > { %p4743_p12 = scmp.ne.s32.totalorder %s5886_s22, %s4742_s14  ;;  %p4748_p7 = scmp.lt.u32.totalorder %s4742_s14, %s5886_s22 }
 0x7ba   : > { %p4744_p13 = pnand %p4743_p12, %p5810_p0 }
 0x7bc   : > { %p4745_p2 = pneg %p4744_p13 }
 0x7be   : > { %p4750_p5 = pnand %p4748_p7, %p4745_p2 }
 0x7c0   : > { %4753 = shalt.err (!%p4750_p5)
}
 0x7c1   : > { %s4816_s29 = smov 128   ;;  %s4817_s23 = smov 8  }
 0x7c2   : > { %4218 = dma.vmem_to_hbm [thread:$0]  (%p5810_p0), %s3230_s21, 4096, %s5886_s22, [#allocation5], %s4816_s29, %s4816_s29, %s4817_s23  }
 0x7c3   : > { %4787 = dma.done.wait (%p5810_p0), [#allocation5], 4096  }
 0x7c4   : > { %4789 = vsyncadd (%p5810_p0), [#allocation5], 4294963200 }
 0x7c5 PF: > { %s5887_s27 = sld [smem:[#allocation24_spill]]  ;;  %s5888_s17 = smov %s4796_s18 }
 0x7c6   : > { %s5889_s18 = smov %s5892_s19 }
 0x7cb   : > { %s27_s16 = sadd.s32 1, %s5887_s27  }
 0x7cc   : > { %p24_p3 = scmp.ge.s32.totalorder %s27_s16, 4   ;;  %s5890_s19 = smov %s27_s16 }
 0x7ce   :  { %26 = sbr.rel (!%p24_p3) target bundleno = 12 (0xc), region = 134 }
 0x7d5   :  { %3245 = vsyncpa [#allocation4], 1 }
 0x7d6   :  { %3247 = vsyncpa [#allocation4 + $0x1], 1 }
 0x7d7   :  { %3248 = vsyncpa [#allocation7], 1 }
 0x7d8   :  { %3249 = vsyncpa [#allocation10], 1 }
 0x7d9   :  { %3250 = vsyncpa [#allocation13], 1 }
 0x7da   :  { %3251 = vsyncpa [#allocation16], 1 }
 0x7db   :  { %3252 = vsyncpa [#allocation5], 1 }
 0x7dc   :  { %3254 = vsyncpa [#allocation5 + $0x1], 1 }

</bundles_post_ra>
